<compile_context>
chip_gen: v6e
topology: v6e:2x2x1
jax: 0.10.0
libtpu: 0.0.40
codegen_flags: <defaults>
</compile_context>

<pallas_src>
import math

import jax
import jax.numpy as jnp
from jax.experimental import pallas as pl
from jax.experimental.pallas import tpu as pltpu

D_MODEL = 32
N_HEADS = 4
D_FF = 64
N_LAYERS = 2
EPS = 1e-6


# ----------------------------- kernel helpers ------------------------------

def _layernorm(x, gamma, beta):
    # torch: std(-1) is unbiased (ddof=1); divide by (std + eps), not sqrt(var+eps)
    mean = jnp.mean(x, axis=-1, keepdims=True)
    var = jnp.sum((x - mean) ** 2, axis=-1, keepdims=True) / (x.shape[-1] - 1)
    std = jnp.sqrt(var)
    return gamma * (x - mean) / (std + EPS) + beta


def _softmax(s):
    m = jnp.max(s, axis=-1, keepdims=True)
    e = jnp.exp(s - m)
    # reciprocal routed to the EUP; exact (approx=False) to keep numerics tight.
    return e * pl.reciprocal(jnp.sum(e, axis=-1, keepdims=True), approx=False)


# ------------------------------ Pallas kernel -------------------------------

def encoder_kernel(x_ref, mask_ref,
                   wqkv_ref, bqkv_ref, wo_ref, bo_ref,
                   w1_ref, b1_ref, w2_ref, b2_ref,
                   lng_ref, lnb_ref, fng_ref, fnb_ref,
                   out_ref,
                   qh_ref, kh_ref, vh_ref):
    D = x_ref.shape[2]
    dk = D // N_HEADS
    inv_sqrt_dk = 1.0 / math.sqrt(dk)

    x = x_ref[0]                          # (T, D) activations, VMEM-resident
    masked = (mask_ref[0] < 0.5)[None]    # (1, T, T) bool, computed once

    for l in range(N_LAYERS):             # static unroll over layers
        # ---- sublayer 0: multi-head self-attention (pre-norm residual) ----
        h = _layernorm(x, lng_ref[l, 0], lnb_ref[l, 0])
        q = jnp.dot(h, wqkv_ref[l, 0], preferred_element_type=jnp.float32) + bqkv_ref[l, 0]
        k = jnp.dot(h, wqkv_ref[l, 1], preferred_element_type=jnp.float32) + bqkv_ref[l, 1]
        v = jnp.dot(h, wqkv_ref[l, 2], preferred_element_type=jnp.float32) + bqkv_ref[l, 2]

        # head split via VMEM scratch: (T, D) -> (H, T, dk) without any
        # in-register minor-dim reshape/transpose.
        for hd in range(N_HEADS):
            qh_ref[hd] = q[:, hd * dk:(hd + 1) * dk]
            kh_ref[hd] = k[:, hd * dk:(hd + 1) * dk]
            vh_ref[hd] = v[:, hd * dk:(hd + 1) * dk]
        qh = qh_ref[...]
        kh = kh_ref[...]
        vh = vh_ref[...]

        # batched over heads: (H, T, dk) x (H, S, dk) -> (H, T, S)
        s = jax.lax.dot_general(qh, kh, (((2,), (2,)), ((0,), (0,))),
                                preferred_element_type=jnp.float32) * inv_sqrt_dk
        s = jnp.where(masked, -1e9, s)
        p = _softmax(s)
        # (H, T, S) x (H, S, dk) -> (H, T, dk)
        heads = jax.lax.dot_general(p, vh, (((2,), (1,)), ((0,), (0,))),
                                    preferred_element_type=jnp.float32)
        # output projection: Wo stored as (H, dk, D);
        # sum_h heads_h @ Wo[h]  ==  concat(heads) @ Wo
        proj = jax.lax.dot_general(heads, wo_ref[l], (((2,), (1,)), ((0,), (0,))),
                                   preferred_element_type=jnp.float32)
        x = x + jnp.sum(proj, axis=0) + bo_ref[l]

        # ---- sublayer 1: position-wise feed forward ----
        h = _layernorm(x, lng_ref[l, 1], lnb_ref[l, 1])
        f = jnp.maximum(
            jnp.dot(h, w1_ref[l], preferred_element_type=jnp.float32) + b1_ref[l], 0.0)
        x = x + jnp.dot(f, w2_ref[l], preferred_element_type=jnp.float32) + b2_ref[l]

    # final LayerNorm, fused into the same kernel (no extra HBM round-trip)
    out_ref[0] = _layernorm(x, fng_ref[...], fnb_ref[...])


# ------------------------------- wrapper -------------------------------------

def _full_spec(arr):
    n = arr.ndim
    return pl.BlockSpec(arr.shape, lambda b, _n=n: (0,) * _n)


def encoder_forward(x, mask, params):
    """Pallas Encoder.forward(x, mask) — all layers + final norm in one kernel."""
    B, T, D = x.shape
    dk = D // N_HEADS
    in_specs = [
        pl.BlockSpec((1, T, D), lambda b: (b, 0, 0)),
        pl.BlockSpec((1, T, T), lambda b: (b, 0, 0)),
        _full_spec(params["wqkv"]), _full_spec(params["bqkv"]),
        _full_spec(params["wo"]), _full_spec(params["bo"]),
        _full_spec(params["ff_w1"]), _full_spec(params["ff_b1"]),
        _full_spec(params["ff_w2"]), _full_spec(params["ff_b2"]),
        _full_spec(params["ln_g"]), _full_spec(params["ln_b"]),
        _full_spec(params["norm_g"]), _full_spec(params["norm_b"]),
    ]
    return pl.pallas_call(
        encoder_kernel,
        out_shape=jax.ShapeDtypeStruct((B, T, D), jnp.float32),
        grid_spec=pltpu.PrefetchScalarGridSpec(
            num_scalar_prefetch=0,
            grid=(B,),
            in_specs=in_specs,
            out_specs=pl.BlockSpec((1, T, D), lambda b: (b, 0, 0)),
            scratch_shapes=[pltpu.VMEM((N_HEADS, T, dk), jnp.float32)] * 3,
        ),
        compiler_params=pltpu.CompilerParams(dimension_semantics=("parallel",)),
    )(x, mask,
      params["wqkv"], params["bqkv"], params["wo"], params["bo"],
      params["ff_w1"], params["ff_b1"], params["ff_w2"], params["ff_b2"],
      params["ln_g"], params["ln_b"], params["norm_g"], params["norm_b"])


# --------------------------- deterministic params ---------------------------

def init_params(key):
    ks = jax.random.split(key, 8)
    s_in = 1.0 / math.sqrt(D_MODEL)
    s_ff = 1.0 / math.sqrt(D_FF)
    dk = D_MODEL // N_HEADS
    return dict(
        wqkv=jax.random.normal(ks[0], (N_LAYERS, 3, D_MODEL, D_MODEL), jnp.float32) * s_in,
        bqkv=jax.random.normal(ks[1], (N_LAYERS, 3, 1, D_MODEL), jnp.float32) * 0.01,
        # Wo pre-split per head: (N_LAYERS, H, dk, D); .reshape(N_LAYERS, D, D)
        # recovers the standard concat-projection matrix.
        wo=(jax.random.normal(ks[2], (N_LAYERS, D_MODEL, D_MODEL), jnp.float32) * s_in
            ).reshape(N_LAYERS, N_HEADS, dk, D_MODEL),
        bo=jax.random.normal(ks[3], (N_LAYERS, 1, D_MODEL), jnp.float32) * 0.01,
        ff_w1=jax.random.normal(ks[4], (N_LAYERS, D_MODEL, D_FF), jnp.float32) * s_in,
        ff_b1=jax.random.normal(ks[5], (N_LAYERS, 1, D_FF), jnp.float32) * 0.01,
        ff_w2=jax.random.normal(ks[6], (N_LAYERS, D_FF, D_MODEL), jnp.float32) * s_ff,
        ff_b2=jax.random.normal(ks[7], (N_LAYERS, 1, D_MODEL), jnp.float32) * 0.01,
        ln_g=jnp.ones((N_LAYERS, 2, 1, D_MODEL), jnp.float32),   # LayerNorm a_2 = ones
        ln_b=jnp.zeros((N_LAYERS, 2, 1, D_MODEL), jnp.float32),  # LayerNorm b_2 = zeros
        norm_g=jnp.ones((1, D_MODEL), jnp.float32),
        norm_b=jnp.zeros((1, D_MODEL), jnp.float32),
    )


# ------------------------------ pure-JAX ref ---------------------------------

def ref_forward(x, mask, params):
    def ln(v, g, b):
        mean = v.mean(-1, keepdims=True)
        var = ((v - mean) ** 2).sum(-1, keepdims=True) / (v.shape[-1] - 1)
        return g * (v - mean) / (jnp.sqrt(var) + EPS) + b

    B, T, D = x.shape
    dk = D // N_HEADS
    wo_full = params["wo"].reshape(N_LAYERS, D, D)
    for l in range(N_LAYERS):
        h = ln(x, params["ln_g"][l, 0], params["ln_b"][l, 0])
        q = h @ params["wqkv"][l, 0] + params["bqkv"][l, 0]
        k = h @ params["wqkv"][l, 1] + params["bqkv"][l, 1]
        v = h @ params["wqkv"][l, 2] + params["bqkv"][l, 2]
        qh = q.reshape(B, T, N_HEADS, dk).transpose(0, 2, 1, 3)
        kh = k.reshape(B, T, N_HEADS, dk).transpose(0, 2, 1, 3)
        vh = v.reshape(B, T, N_HEADS, dk).transpose(0, 2, 1, 3)
        s = jnp.einsum('bhtd,bhsd->bhts', qh, kh) / math.sqrt(dk)
        s = jnp.where(mask[:, None] < 0.5, -1e9, s)
        p = jax.nn.softmax(s, axis=-1)
        o = jnp.einsum('bhts,bhsd->bhtd', p, vh).transpose(0, 2, 1, 3).reshape(B, T, D)
        x = x + o @ wo_full[l] + params["bo"][l]
        h = ln(x, params["ln_g"][l, 1], params["ln_b"][l, 1])
        f = jax.nn.relu(h @ params["ff_w1"][l] + params["ff_b1"][l])
        x = x + f @ params["ff_w2"][l] + params["ff_b2"][l]
    return ln(x, params["norm_g"], params["norm_b"])


# ----------------------------------- main ------------------------------------

if __name__ == "__main__":
    key = jax.random.PRNGKey(0)
    kx, kp = jax.random.split(key, 2)
    B, T = 2, 8

    x = jax.random.normal(kx, (B, T, D_MODEL), jnp.float32)
    # padding-style mask: batch 0 attends everywhere; batch 1 masks out its
    # last two key positions (1.0 = attend, 0.0 = masked).
    key_valid = jnp.array([[1.0] * T,
                           [1.0] * (T - 2) + [0.0] * 2], jnp.float32)      # (B, T)
    mask = jnp.broadcast_to(key_valid[:, None, :], (B, T, T)).astype(jnp.float32)
    params = init_params(kp)

    out = encoder_forward(x, mask, params)
    out = jax.block_until_ready(out)

    ref = ref_forward(x, mask, params)
    assert out.shape == (B, T, D_MODEL)
    err = float(jnp.max(jnp.abs(out - ref)))
    assert jnp.allclose(out, ref, atol=2e-3, rtol=2e-3), f"max abs err {err}"
    print("KERNEL_OK")
</pallas_src>

<mosaic_0001>
module attributes {stable_mosaic.version = 11 : i64} {
  func.func @encoder_kernel(%arg0: i32, %arg1: memref<1x8x32xf32, #tpu.memory_space<vmem>>, %arg2: memref<1x8x8xf32, #tpu.memory_space<vmem>>, %arg3: memref<2x3x32x32xf32, #tpu.memory_space<vmem>>, %arg4: memref<2x3x1x32xf32, #tpu.memory_space<vmem>>, %arg5: memref<2x4x8x32xf32, #tpu.memory_space<vmem>>, %arg6: memref<2x1x32xf32, #tpu.memory_space<vmem>>, %arg7: memref<2x32x64xf32, #tpu.memory_space<vmem>>, %arg8: memref<2x1x64xf32, #tpu.memory_space<vmem>>, %arg9: memref<2x64x32xf32, #tpu.memory_space<vmem>>, %arg10: memref<2x1x32xf32, #tpu.memory_space<vmem>>, %arg11: memref<2x2x1x32xf32, #tpu.memory_space<vmem>>, %arg12: memref<2x2x1x32xf32, #tpu.memory_space<vmem>>, %arg13: memref<1x32xf32, #tpu.memory_space<vmem>>, %arg14: memref<1x32xf32, #tpu.memory_space<vmem>>, %arg15: memref<1x8x32xf32, #tpu.memory_space<vmem>>, %arg16: memref<4x8x8xf32, #tpu.memory_space<vmem>>, %arg17: memref<4x8x8xf32, #tpu.memory_space<vmem>>, %arg18: memref<4x8x8xf32, #tpu.memory_space<vmem>>) attributes {dimension_semantics = [#tpu.dimension_semantics<parallel>], iteration_bounds = array<i64: 2>, scalar_prefetch = 0 : i64, scratch_operands = 3 : i64, tpu.core_type = #tpu.core_type<tc>, window_params = [{transform_indices = @transform_0, window_bounds = array<i64: 1, 8, 32>}, {transform_indices = @transform_1, window_bounds = array<i64: 1, 8, 8>}, {pipeline_mode = #tpu.pipeline_mode<synchronous>, transform_indices = @transform_2, window_bounds = array<i64: 2, 3, 32, 32>}, {pipeline_mode = #tpu.pipeline_mode<synchronous>, transform_indices = @transform_3, window_bounds = array<i64: 2, 3, 1, 32>}, {pipeline_mode = #tpu.pipeline_mode<synchronous>, transform_indices = @transform_4, window_bounds = array<i64: 2, 4, 8, 32>}, {pipeline_mode = #tpu.pipeline_mode<synchronous>, transform_indices = @transform_5, window_bounds = array<i64: 2, 1, 32>}, {pipeline_mode = #tpu.pipeline_mode<synchronous>, transform_indices = @transform_6, window_bounds = array<i64: 2, 32, 64>}, {pipeline_mode = #tpu.pipeline_mode<synchronous>, transform_indices = @transform_7, window_bounds = array<i64: 2, 1, 64>}, {pipeline_mode = #tpu.pipeline_mode<synchronous>, transform_indices = @transform_8, window_bounds = array<i64: 2, 64, 32>}, {pipeline_mode = #tpu.pipeline_mode<synchronous>, transform_indices = @transform_9, window_bounds = array<i64: 2, 1, 32>}, {pipeline_mode = #tpu.pipeline_mode<synchronous>, transform_indices = @transform_10, window_bounds = array<i64: 2, 2, 1, 32>}, {pipeline_mode = #tpu.pipeline_mode<synchronous>, transform_indices = @transform_11, window_bounds = array<i64: 2, 2, 1, 32>}, {pipeline_mode = #tpu.pipeline_mode<synchronous>, transform_indices = @transform_12, window_bounds = array<i64: 1, 32>}, {pipeline_mode = #tpu.pipeline_mode<synchronous>, transform_indices = @transform_13, window_bounds = array<i64: 1, 32>}, {transform_indices = @transform_14, window_bounds = array<i64: 1, 8, 32>}]} {
    %c0 = arith.constant 0 : index
    %c0_0 = arith.constant 0 : index
    %c0_1 = arith.constant 0 : index
    %0 = vector.load %arg1[%c0, %c0_0, %c0_1] : memref<1x8x32xf32, #tpu.memory_space<vmem>>, vector<1x8x32xf32>
    %1 = vector.shape_cast %0 : vector<1x8x32xf32> to vector<8x32xf32>
    %c0_2 = arith.constant 0 : index
    %c0_3 = arith.constant 0 : index
    %c0_4 = arith.constant 0 : index
    %2 = vector.load %arg2[%c0_2, %c0_3, %c0_4] : memref<1x8x8xf32, #tpu.memory_space<vmem>>, vector<1x8x8xf32>
    %3 = vector.shape_cast %2 : vector<1x8x8xf32> to vector<8x8xf32>
    %cst = arith.constant 5.000000e-01 : f32
    %4 = vector.broadcast %cst : f32 to vector<8x8xf32>
    %5 = arith.cmpf olt, %3, %4 : vector<8x8xf32>
    %6 = vector.shape_cast %5 : vector<8x8xi1> to vector<1x8x8xi1>
    %c0_5 = arith.constant 0 : index
    %c0_6 = arith.constant 0 : index
    %c0_7 = arith.constant 0 : index
    %c0_8 = arith.constant 0 : index
    %7 = vector.load %arg11[%c0_5, %c0_6, %c0_7, %c0_8] : memref<2x2x1x32xf32, #tpu.memory_space<vmem>>, vector<1x1x1x32xf32>
    %8 = vector.shape_cast %7 : vector<1x1x1x32xf32> to vector<1x32xf32>
    %c0_9 = arith.constant 0 : index
    %c0_10 = arith.constant 0 : index
    %c0_11 = arith.constant 0 : index
    %c0_12 = arith.constant 0 : index
    %9 = vector.load %arg12[%c0_9, %c0_10, %c0_11, %c0_12] : memref<2x2x1x32xf32, #tpu.memory_space<vmem>>, vector<1x1x1x32xf32>
    %10 = vector.shape_cast %9 : vector<1x1x1x32xf32> to vector<1x32xf32>
    %cst_13 = arith.constant dense<0.000000e+00> : vector<8xf32>
    %11 = vector.multi_reduction <add>, %1, %cst_13 [1] : vector<8x32xf32> to vector<8xf32>
    %12 = vector.shape_cast %11 : vector<8xf32> to vector<8x1xf32>
    %cst_14 = arith.constant 3.200000e+01 : f32
    %13 = vector.broadcast %cst_14 : f32 to vector<8x1xf32>
    %14 = arith.divf %12, %13 : vector<8x1xf32>
    %15 = vector.broadcast %14 : vector<8x1xf32> to vector<8x32xf32>
    %16 = arith.subf %1, %15 : vector<8x32xf32>
    %17 = arith.mulf %16, %16 : vector<8x32xf32>
    %cst_15 = arith.constant dense<0.000000e+00> : vector<8xf32>
    %18 = vector.multi_reduction <add>, %17, %cst_15 [1] : vector<8x32xf32> to vector<8xf32>
    %19 = vector.shape_cast %18 : vector<8xf32> to vector<8x1xf32>
    %cst_16 = arith.constant 3.100000e+01 : f32
    %20 = vector.broadcast %cst_16 : f32 to vector<8x1xf32>
    %21 = arith.divf %19, %20 : vector<8x1xf32>
    %22 = math.sqrt %21 : vector<8x1xf32>
    %23 = vector.broadcast %14 : vector<8x1xf32> to vector<8x32xf32>
    %24 = arith.subf %1, %23 : vector<8x32xf32>
    %25 = vector.broadcast %8 : vector<1x32xf32> to vector<8x32xf32>
    %26 = arith.mulf %25, %24 : vector<8x32xf32>
    %cst_17 = arith.constant 9.99999997E-7 : f32
    %27 = vector.broadcast %cst_17 : f32 to vector<8x1xf32>
    %28 = arith.addf %22, %27 : vector<8x1xf32>
    %29 = vector.broadcast %28 : vector<8x1xf32> to vector<8x32xf32>
    %30 = arith.divf %26, %29 : vector<8x32xf32>
    %31 = vector.broadcast %10 : vector<1x32xf32> to vector<8x32xf32>
    %32 = arith.addf %30, %31 : vector<8x32xf32>
    %c0_18 = arith.constant 0 : index
    %c0_19 = arith.constant 0 : index
    %c0_20 = arith.constant 0 : index
    %c0_21 = arith.constant 0 : index
    %33 = vector.load %arg3[%c0_18, %c0_19, %c0_20, %c0_21] : memref<2x3x32x32xf32, #tpu.memory_space<vmem>>, vector<1x1x32x32xf32>
    %34 = vector.shape_cast %33 : vector<1x1x32x32xf32> to vector<32x32xf32>
    %cst_22 = arith.constant dense<0.000000e+00> : vector<8x32xf32>
    %35 = tpu.matmul %32, %34, %cst_22 {dimension_numbers = #tpu.dot_dimension_numbers<[1], [0], [0], [1], [0, 0, 1, 1], [], []>} : vector<8x32xf32>, vector<32x32xf32>, vector<8x32xf32> -> vector<8x32xf32>
    %c0_23 = arith.constant 0 : index
    %c0_24 = arith.constant 0 : index
    %c0_25 = arith.constant 0 : index
    %c0_26 = arith.constant 0 : index
    %36 = vector.load %arg4[%c0_23, %c0_24, %c0_25, %c0_26] : memref<2x3x1x32xf32, #tpu.memory_space<vmem>>, vector<1x1x1x32xf32>
    %37 = vector.shape_cast %36 : vector<1x1x1x32xf32> to vector<1x32xf32>
    %38 = vector.broadcast %37 : vector<1x32xf32> to vector<8x32xf32>
    %39 = arith.addf %35, %38 : vector<8x32xf32>
    %c0_27 = arith.constant 0 : index
    %c1 = arith.constant 1 : index
    %c0_28 = arith.constant 0 : index
    %c0_29 = arith.constant 0 : index
    %40 = vector.load %arg3[%c0_27, %c1, %c0_28, %c0_29] : memref<2x3x32x32xf32, #tpu.memory_space<vmem>>, vector<1x1x32x32xf32>
    %41 = vector.shape_cast %40 : vector<1x1x32x32xf32> to vector<32x32xf32>
    %cst_30 = arith.constant dense<0.000000e+00> : vector<8x32xf32>
    %42 = tpu.matmul %32, %41, %cst_30 {dimension_numbers = #tpu.dot_dimension_numbers<[1], [0], [0], [1], [0, 0, 1, 1], [], []>} : vector<8x32xf32>, vector<32x32xf32>, vector<8x32xf32> -> vector<8x32xf32>
    %c0_31 = arith.constant 0 : index
    %c1_32 = arith.constant 1 : index
    %c0_33 = arith.constant 0 : index
    %c0_34 = arith.constant 0 : index
    %43 = vector.load %arg4[%c0_31, %c1_32, %c0_33, %c0_34] : memref<2x3x1x32xf32, #tpu.memory_space<vmem>>, vector<1x1x1x32xf32>
    %44 = vector.shape_cast %43 : vector<1x1x1x32xf32> to vector<1x32xf32>
    %45 = vector.broadcast %44 : vector<1x32xf32> to vector<8x32xf32>
    %46 = arith.addf %42, %45 : vector<8x32xf32>
    %c0_35 = arith.constant 0 : index
    %c2 = arith.constant 2 : index
    %c0_36 = arith.constant 0 : index
    %c0_37 = arith.constant 0 : index
    %47 = vector.load %arg3[%c0_35, %c2, %c0_36, %c0_37] : memref<2x3x32x32xf32, #tpu.memory_space<vmem>>, vector<1x1x32x32xf32>
    %48 = vector.shape_cast %47 : vector<1x1x32x32xf32> to vector<32x32xf32>
    %cst_38 = arith.constant dense<0.000000e+00> : vector<8x32xf32>
    %49 = tpu.matmul %32, %48, %cst_38 {dimension_numbers = #tpu.dot_dimension_numbers<[1], [0], [0], [1], [0, 0, 1, 1], [], []>} : vector<8x32xf32>, vector<32x32xf32>, vector<8x32xf32> -> vector<8x32xf32>
    %c0_39 = arith.constant 0 : index
    %c2_40 = arith.constant 2 : index
    %c0_41 = arith.constant 0 : index
    %c0_42 = arith.constant 0 : index
    %50 = vector.load %arg4[%c0_39, %c2_40, %c0_41, %c0_42] : memref<2x3x1x32xf32, #tpu.memory_space<vmem>>, vector<1x1x1x32xf32>
    %51 = vector.shape_cast %50 : vector<1x1x1x32xf32> to vector<1x32xf32>
    %52 = vector.broadcast %51 : vector<1x32xf32> to vector<8x32xf32>
    %53 = arith.addf %49, %52 : vector<8x32xf32>
    %54 = vector.extract_strided_slice %39 {offsets = [0, 0], sizes = [8, 8], strides = [1, 1]} : vector<8x32xf32> to vector<8x8xf32>
    %c0_43 = arith.constant 0 : index
    %c0_44 = arith.constant 0 : index
    %c0_45 = arith.constant 0 : index
    %55 = vector.load %arg16[%c0_43, %c0_44, %c0_45] : memref<4x8x8xf32, #tpu.memory_space<vmem>>, vector<1x8x8xf32>
    %56 = vector.shape_cast %55 : vector<1x8x8xf32> to vector<8x8xf32>
    %57 = vector.shape_cast %54 : vector<8x8xf32> to vector<1x8x8xf32>
    tpu.vector_store %arg16[%c0_43, %c0_44, %c0_45], %57 {strides = array<i32>} : memref<4x8x8xf32, #tpu.memory_space<vmem>>, vector<1x8x8xf32>,
    %58 = vector.extract_strided_slice %46 {offsets = [0, 0], sizes = [8, 8], strides = [1, 1]} : vector<8x32xf32> to vector<8x8xf32>
    %c0_46 = arith.constant 0 : index
    %c0_47 = arith.constant 0 : index
    %c0_48 = arith.constant 0 : index
    %59 = vector.load %arg17[%c0_46, %c0_47, %c0_48] : memref<4x8x8xf32, #tpu.memory_space<vmem>>, vector<1x8x8xf32>
    %60 = vector.shape_cast %59 : vector<1x8x8xf32> to vector<8x8xf32>
    %61 = vector.shape_cast %58 : vector<8x8xf32> to vector<1x8x8xf32>
    tpu.vector_store %arg17[%c0_46, %c0_47, %c0_48], %61 {strides = array<i32>} : memref<4x8x8xf32, #tpu.memory_space<vmem>>, vector<1x8x8xf32>,
    %62 = vector.extract_strided_slice %53 {offsets = [0, 0], sizes = [8, 8], strides = [1, 1]} : vector<8x32xf32> to vector<8x8xf32>
    %c0_49 = arith.constant 0 : index
    %c0_50 = arith.constant 0 : index
    %c0_51 = arith.constant 0 : index
    %63 = vector.load %arg18[%c0_49, %c0_50, %c0_51] : memref<4x8x8xf32, #tpu.memory_space<vmem>>, vector<1x8x8xf32>
    %64 = vector.shape_cast %63 : vector<1x8x8xf32> to vector<8x8xf32>
    %65 = vector.shape_cast %62 : vector<8x8xf32> to vector<1x8x8xf32>
    tpu.vector_store %arg18[%c0_49, %c0_50, %c0_51], %65 {strides = array<i32>} : memref<4x8x8xf32, #tpu.memory_space<vmem>>, vector<1x8x8xf32>,
    %66 = vector.extract_strided_slice %39 {offsets = [0, 8], sizes = [8, 8], strides = [1, 1]} : vector<8x32xf32> to vector<8x8xf32>
    %c1_52 = arith.constant 1 : index
    %c0_53 = arith.constant 0 : index
    %c0_54 = arith.constant 0 : index
    %67 = vector.load %arg16[%c1_52, %c0_53, %c0_54] : memref<4x8x8xf32, #tpu.memory_space<vmem>>, vector<1x8x8xf32>
    %68 = vector.shape_cast %67 : vector<1x8x8xf32> to vector<8x8xf32>
    %69 = vector.shape_cast %66 : vector<8x8xf32> to vector<1x8x8xf32>
    tpu.vector_store %arg16[%c1_52, %c0_53, %c0_54], %69 {strides = array<i32>} : memref<4x8x8xf32, #tpu.memory_space<vmem>>, vector<1x8x8xf32>,
    %70 = vector.extract_strided_slice %46 {offsets = [0, 8], sizes = [8, 8], strides = [1, 1]} : vector<8x32xf32> to vector<8x8xf32>
    %c1_55 = arith.constant 1 : index
    %c0_56 = arith.constant 0 : index
    %c0_57 = arith.constant 0 : index
    %71 = vector.load %arg17[%c1_55, %c0_56, %c0_57] : memref<4x8x8xf32, #tpu.memory_space<vmem>>, vector<1x8x8xf32>
    %72 = vector.shape_cast %71 : vector<1x8x8xf32> to vector<8x8xf32>
    %73 = vector.shape_cast %70 : vector<8x8xf32> to vector<1x8x8xf32>
    tpu.vector_store %arg17[%c1_55, %c0_56, %c0_57], %73 {strides = array<i32>} : memref<4x8x8xf32, #tpu.memory_space<vmem>>, vector<1x8x8xf32>,
    %74 = vector.extract_strided_slice %53 {offsets = [0, 8], sizes = [8, 8], strides = [1, 1]} : vector<8x32xf32> to vector<8x8xf32>
    %c1_58 = arith.constant 1 : index
    %c0_59 = arith.constant 0 : index
    %c0_60 = arith.constant 0 : index
    %75 = vector.load %arg18[%c1_58, %c0_59, %c0_60] : memref<4x8x8xf32, #tpu.memory_space<vmem>>, vector<1x8x8xf32>
    %76 = vector.shape_cast %75 : vector<1x8x8xf32> to vector<8x8xf32>
    %77 = vector.shape_cast %74 : vector<8x8xf32> to vector<1x8x8xf32>
    tpu.vector_store %arg18[%c1_58, %c0_59, %c0_60], %77 {strides = array<i32>} : memref<4x8x8xf32, #tpu.memory_space<vmem>>, vector<1x8x8xf32>,
    %78 = vector.extract_strided_slice %39 {offsets = [0, 16], sizes = [8, 8], strides = [1, 1]} : vector<8x32xf32> to vector<8x8xf32>
    %c2_61 = arith.constant 2 : index
    %c0_62 = arith.constant 0 : index
    %c0_63 = arith.constant 0 : index
    %79 = vector.load %arg16[%c2_61, %c0_62, %c0_63] : memref<4x8x8xf32, #tpu.memory_space<vmem>>, vector<1x8x8xf32>
    %80 = vector.shape_cast %79 : vector<1x8x8xf32> to vector<8x8xf32>
    %81 = vector.shape_cast %78 : vector<8x8xf32> to vector<1x8x8xf32>
    tpu.vector_store %arg16[%c2_61, %c0_62, %c0_63], %81 {strides = array<i32>} : memref<4x8x8xf32, #tpu.memory_space<vmem>>, vector<1x8x8xf32>,
    %82 = vector.extract_strided_slice %46 {offsets = [0, 16], sizes = [8, 8], strides = [1, 1]} : vector<8x32xf32> to vector<8x8xf32>
    %c2_64 = arith.constant 2 : index
    %c0_65 = arith.constant 0 : index
    %c0_66 = arith.constant 0 : index
    %83 = vector.load %arg17[%c2_64, %c0_65, %c0_66] : memref<4x8x8xf32, #tpu.memory_space<vmem>>, vector<1x8x8xf32>
    %84 = vector.shape_cast %83 : vector<1x8x8xf32> to vector<8x8xf32>
    %85 = vector.shape_cast %82 : vector<8x8xf32> to vector<1x8x8xf32>
    tpu.vector_store %arg17[%c2_64, %c0_65, %c0_66], %85 {strides = array<i32>} : memref<4x8x8xf32, #tpu.memory_space<vmem>>, vector<1x8x8xf32>,
    %86 = vector.extract_strided_slice %53 {offsets = [0, 16], sizes = [8, 8], strides = [1, 1]} : vector<8x32xf32> to vector<8x8xf32>
    %c2_67 = arith.constant 2 : index
    %c0_68 = arith.constant 0 : index
    %c0_69 = arith.constant 0 : index
    %87 = vector.load %arg18[%c2_67, %c0_68, %c0_69] : memref<4x8x8xf32, #tpu.memory_space<vmem>>, vector<1x8x8xf32>
    %88 = vector.shape_cast %87 : vector<1x8x8xf32> to vector<8x8xf32>
    %89 = vector.shape_cast %86 : vector<8x8xf32> to vector<1x8x8xf32>
    tpu.vector_store %arg18[%c2_67, %c0_68, %c0_69], %89 {strides = array<i32>} : memref<4x8x8xf32, #tpu.memory_space<vmem>>, vector<1x8x8xf32>,
    %90 = vector.extract_strided_slice %39 {offsets = [0, 24], sizes = [8, 8], strides = [1, 1]} : vector<8x32xf32> to vector<8x8xf32>
    %c3 = arith.constant 3 : index
    %c0_70 = arith.constant 0 : index
    %c0_71 = arith.constant 0 : index
    %91 = vector.load %arg16[%c3, %c0_70, %c0_71] : memref<4x8x8xf32, #tpu.memory_space<vmem>>, vector<1x8x8xf32>
    %92 = vector.shape_cast %91 : vector<1x8x8xf32> to vector<8x8xf32>
    %93 = vector.shape_cast %90 : vector<8x8xf32> to vector<1x8x8xf32>
    tpu.vector_store %arg16[%c3, %c0_70, %c0_71], %93 {strides = array<i32>} : memref<4x8x8xf32, #tpu.memory_space<vmem>>, vector<1x8x8xf32>,
    %94 = vector.extract_strided_slice %46 {offsets = [0, 24], sizes = [8, 8], strides = [1, 1]} : vector<8x32xf32> to vector<8x8xf32>
    %c3_72 = arith.constant 3 : index
    %c0_73 = arith.constant 0 : index
    %c0_74 = arith.constant 0 : index
    %95 = vector.load %arg17[%c3_72, %c0_73, %c0_74] : memref<4x8x8xf32, #tpu.memory_space<vmem>>, vector<1x8x8xf32>
    %96 = vector.shape_cast %95 : vector<1x8x8xf32> to vector<8x8xf32>
    %97 = vector.shape_cast %94 : vector<8x8xf32> to vector<1x8x8xf32>
    tpu.vector_store %arg17[%c3_72, %c0_73, %c0_74], %97 {strides = array<i32>} : memref<4x8x8xf32, #tpu.memory_space<vmem>>, vector<1x8x8xf32>,
    %98 = vector.extract_strided_slice %53 {offsets = [0, 24], sizes = [8, 8], strides = [1, 1]} : vector<8x32xf32> to vector<8x8xf32>
    %c3_75 = arith.constant 3 : index
    %c0_76 = arith.constant 0 : index
    %c0_77 = arith.constant 0 : index
    %99 = vector.load %arg18[%c3_75, %c0_76, %c0_77] : memref<4x8x8xf32, #tpu.memory_space<vmem>>, vector<1x8x8xf32>
    %100 = vector.shape_cast %99 : vector<1x8x8xf32> to vector<8x8xf32>
    %101 = vector.shape_cast %98 : vector<8x8xf32> to vector<1x8x8xf32>
    tpu.vector_store %arg18[%c3_75, %c0_76, %c0_77], %101 {strides = array<i32>} : memref<4x8x8xf32, #tpu.memory_space<vmem>>, vector<1x8x8xf32>,
    %c0_78 = arith.constant 0 : index
    %c0_79 = arith.constant 0 : index
    %c0_80 = arith.constant 0 : index
    %102 = vector.load %arg16[%c0_78, %c0_79, %c0_80] : memref<4x8x8xf32, #tpu.memory_space<vmem>>, vector<4x8x8xf32>
    %c0_81 = arith.constant 0 : index
    %c0_82 = arith.constant 0 : index
    %c0_83 = arith.constant 0 : index
    %103 = vector.load %arg17[%c0_81, %c0_82, %c0_83] : memref<4x8x8xf32, #tpu.memory_space<vmem>>, vector<4x8x8xf32>
    %c0_84 = arith.constant 0 : index
    %c0_85 = arith.constant 0 : index
    %c0_86 = arith.constant 0 : index
    %104 = vector.load %arg18[%c0_84, %c0_85, %c0_86] : memref<4x8x8xf32, #tpu.memory_space<vmem>>, vector<4x8x8xf32>
    %cst_87 = arith.constant dense<0.000000e+00> : vector<4x8x8xf32>
    %105 = tpu.matmul %102, %103, %cst_87 {dimension_numbers = #tpu.dot_dimension_numbers<[2], [2], [1], [1], [0, 0, 0, 1, 1, 1], [0], [0]>} : vector<4x8x8xf32>, vector<4x8x8xf32>, vector<4x8x8xf32> -> vector<4x8x8xf32>
    %cst_88 = arith.constant 0.353553385 : f32
    %106 = vector.broadcast %cst_88 : f32 to vector<4x8x8xf32>
    %107 = arith.mulf %105, %106 : vector<4x8x8xf32>
    %cst_89 = arith.constant -1.000000e+09 : f32
    %108 = vector.shape_cast %6 : vector<1x8x8xi1> to vector<1x8x8xi1>
    %109 = vector.broadcast %108 : vector<1x8x8xi1> to vector<4x8x8xi1>
    %110 = vector.broadcast %cst_89 : f32 to vector<4x8x8xf32>
    %111 = arith.select %109, %110, %107 : vector<4x8x8xi1>, vector<4x8x8xf32>
    %cst_90 = arith.constant dense<0xFF800000> : vector<4x8xf32>
    %112 = vector.multi_reduction <maximumf>, %111, %cst_90 [2] : vector<4x8x8xf32> to vector<4x8xf32>
    %113 = vector.shape_cast %112 : vector<4x8xf32> to vector<4x8x1xf32>
    %114 = vector.broadcast %113 : vector<4x8x1xf32> to vector<4x8x8xf32>
    %115 = arith.subf %111, %114 : vector<4x8x8xf32>
    %116 = math.exp %115 : vector<4x8x8xf32>
    %cst_91 = arith.constant dense<0.000000e+00> : vector<4x8xf32>
    %117 = vector.multi_reduction <add>, %116, %cst_91 [2] : vector<4x8x8xf32> to vector<4x8xf32>
    %118 = vector.shape_cast %117 : vector<4x8xf32> to vector<4x8x1xf32>
    %119 = tpu.reciprocal %118 : vector<4x8x1xf32> -> vector<4x8x1xf32>
    %120 = vector.broadcast %119 : vector<4x8x1xf32> to vector<4x8x8xf32>
    %121 = arith.mulf %116, %120 : vector<4x8x8xf32>
    %cst_92 = arith.constant dense<0.000000e+00> : vector<4x8x8xf32>
    %122 = tpu.matmul %121, %104, %cst_92 {dimension_numbers = #tpu.dot_dimension_numbers<[2], [1], [1], [2], [0, 0, 0, 1, 1, 2], [0], [0]>} : vector<4x8x8xf32>, vector<4x8x8xf32>, vector<4x8x8xf32> -> vector<4x8x8xf32>
    %c0_93 = arith.constant 0 : index
    %c0_94 = arith.constant 0 : index
    %c0_95 = arith.constant 0 : index
    %c0_96 = arith.constant 0 : index
    %123 = vector.load %arg5[%c0_93, %c0_94, %c0_95, %c0_96] : memref<2x4x8x32xf32, #tpu.memory_space<vmem>>, vector<1x4x8x32xf32>
    %124 = vector.shape_cast %123 : vector<1x4x8x32xf32> to vector<4x8x32xf32>
    %cst_97 = arith.constant dense<0.000000e+00> : vector<4x8x32xf32>
    %125 = tpu.matmul %122, %124, %cst_97 {dimension_numbers = #tpu.dot_dimension_numbers<[2], [1], [1], [2], [0, 0, 0, 1, 1, 2], [0], [0]>} : vector<4x8x8xf32>, vector<4x8x32xf32>, vector<4x8x32xf32> -> vector<4x8x32xf32>
    %cst_98 = arith.constant dense<0.000000e+00> : vector<8x32xf32>
    %126 = vector.multi_reduction <add>, %125, %cst_98 [0] : vector<4x8x32xf32> to vector<8x32xf32>
    %127 = arith.addf %1, %126 : vector<8x32xf32>
    %c0_99 = arith.constant 0 : index
    %c0_100 = arith.constant 0 : index
    %c0_101 = arith.constant 0 : index
    %128 = vector.load %arg6[%c0_99, %c0_100, %c0_101] : memref<2x1x32xf32, #tpu.memory_space<vmem>>, vector<1x1x32xf32>
    %129 = vector.shape_cast %128 : vector<1x1x32xf32> to vector<1x32xf32>
    %130 = vector.broadcast %129 : vector<1x32xf32> to vector<8x32xf32>
    %131 = arith.addf %127, %130 : vector<8x32xf32>
    %c0_102 = arith.constant 0 : index
    %c1_103 = arith.constant 1 : index
    %c0_104 = arith.constant 0 : index
    %c0_105 = arith.constant 0 : index
    %132 = vector.load %arg11[%c0_102, %c1_103, %c0_104, %c0_105] : memref<2x2x1x32xf32, #tpu.memory_space<vmem>>, vector<1x1x1x32xf32>
    %133 = vector.shape_cast %132 : vector<1x1x1x32xf32> to vector<1x32xf32>
    %c0_106 = arith.constant 0 : index
    %c1_107 = arith.constant 1 : index
    %c0_108 = arith.constant 0 : index
    %c0_109 = arith.constant 0 : index
    %134 = vector.load %arg12[%c0_106, %c1_107, %c0_108, %c0_109] : memref<2x2x1x32xf32, #tpu.memory_space<vmem>>, vector<1x1x1x32xf32>
    %135 = vector.shape_cast %134 : vector<1x1x1x32xf32> to vector<1x32xf32>
    %cst_110 = arith.constant dense<0.000000e+00> : vector<8xf32>
    %136 = vector.multi_reduction <add>, %131, %cst_110 [1] : vector<8x32xf32> to vector<8xf32>
    %137 = vector.shape_cast %136 : vector<8xf32> to vector<8x1xf32>
    %cst_111 = arith.constant 3.200000e+01 : f32
    %138 = vector.broadcast %cst_111 : f32 to vector<8x1xf32>
    %139 = arith.divf %137, %138 : vector<8x1xf32>
    %140 = vector.broadcast %139 : vector<8x1xf32> to vector<8x32xf32>
    %141 = arith.subf %131, %140 : vector<8x32xf32>
    %142 = arith.mulf %141, %141 : vector<8x32xf32>
    %cst_112 = arith.constant dense<0.000000e+00> : vector<8xf32>
    %143 = vector.multi_reduction <add>, %142, %cst_112 [1] : vector<8x32xf32> to vector<8xf32>
    %144 = vector.shape_cast %143 : vector<8xf32> to vector<8x1xf32>
    %cst_113 = arith.constant 3.100000e+01 : f32
    %145 = vector.broadcast %cst_113 : f32 to vector<8x1xf32>
    %146 = arith.divf %144, %145 : vector<8x1xf32>
    %147 = math.sqrt %146 : vector<8x1xf32>
    %148 = vector.broadcast %139 : vector<8x1xf32> to vector<8x32xf32>
    %149 = arith.subf %131, %148 : vector<8x32xf32>
    %150 = vector.broadcast %133 : vector<1x32xf32> to vector<8x32xf32>
    %151 = arith.mulf %150, %149 : vector<8x32xf32>
    %cst_114 = arith.constant 9.99999997E-7 : f32
    %152 = vector.broadcast %cst_114 : f32 to vector<8x1xf32>
    %153 = arith.addf %147, %152 : vector<8x1xf32>
    %154 = vector.broadcast %153 : vector<8x1xf32> to vector<8x32xf32>
    %155 = arith.divf %151, %154 : vector<8x32xf32>
    %156 = vector.broadcast %135 : vector<1x32xf32> to vector<8x32xf32>
    %157 = arith.addf %155, %156 : vector<8x32xf32>
    %c0_115 = arith.constant 0 : index
    %c0_116 = arith.constant 0 : index
    %c0_117 = arith.constant 0 : index
    %158 = vector.load %arg7[%c0_115, %c0_116, %c0_117] : memref<2x32x64xf32, #tpu.memory_space<vmem>>, vector<1x32x64xf32>
    %159 = vector.shape_cast %158 : vector<1x32x64xf32> to vector<32x64xf32>
    %cst_118 = arith.constant dense<0.000000e+00> : vector<8x64xf32>
    %160 = tpu.matmul %157, %159, %cst_118 {dimension_numbers = #tpu.dot_dimension_numbers<[1], [0], [0], [1], [0, 0, 1, 1], [], []>} : vector<8x32xf32>, vector<32x64xf32>, vector<8x64xf32> -> vector<8x64xf32>
    %c0_119 = arith.constant 0 : index
    %c0_120 = arith.constant 0 : index
    %c0_121 = arith.constant 0 : index
    %161 = vector.load %arg8[%c0_119, %c0_120, %c0_121] : memref<2x1x64xf32, #tpu.memory_space<vmem>>, vector<1x1x64xf32>
    %162 = vector.shape_cast %161 : vector<1x1x64xf32> to vector<1x64xf32>
    %163 = vector.broadcast %162 : vector<1x64xf32> to vector<8x64xf32>
    %164 = arith.addf %160, %163 : vector<8x64xf32>
    %cst_122 = arith.constant 0.000000e+00 : f32
    %165 = vector.broadcast %cst_122 : f32 to vector<8x64xf32>
    %166 = arith.maximumf %164, %165 : vector<8x64xf32>
    %c0_123 = arith.constant 0 : index
    %c0_124 = arith.constant 0 : index
    %c0_125 = arith.constant 0 : index
    %167 = vector.load %arg9[%c0_123, %c0_124, %c0_125] : memref<2x64x32xf32, #tpu.memory_space<vmem>>, vector<1x64x32xf32>
    %168 = vector.shape_cast %167 : vector<1x64x32xf32> to vector<64x32xf32>
    %cst_126 = arith.constant dense<0.000000e+00> : vector<8x32xf32>
    %169 = tpu.matmul %166, %168, %cst_126 {dimension_numbers = #tpu.dot_dimension_numbers<[1], [0], [0], [1], [0, 0, 1, 1], [], []>} : vector<8x64xf32>, vector<64x32xf32>, vector<8x32xf32> -> vector<8x32xf32>
    %170 = arith.addf %131, %169 : vector<8x32xf32>
    %c0_127 = arith.constant 0 : index
    %c0_128 = arith.constant 0 : index
    %c0_129 = arith.constant 0 : index
    %171 = vector.load %arg10[%c0_127, %c0_128, %c0_129] : memref<2x1x32xf32, #tpu.memory_space<vmem>>, vector<1x1x32xf32>
    %172 = vector.shape_cast %171 : vector<1x1x32xf32> to vector<1x32xf32>
    %173 = vector.broadcast %172 : vector<1x32xf32> to vector<8x32xf32>
    %174 = arith.addf %170, %173 : vector<8x32xf32>
    %c1_130 = arith.constant 1 : index
    %c0_131 = arith.constant 0 : index
    %c0_132 = arith.constant 0 : index
    %c0_133 = arith.constant 0 : index
    %175 = vector.load %arg11[%c1_130, %c0_131, %c0_132, %c0_133] : memref<2x2x1x32xf32, #tpu.memory_space<vmem>>, vector<1x1x1x32xf32>
    %176 = vector.shape_cast %175 : vector<1x1x1x32xf32> to vector<1x32xf32>
    %c1_134 = arith.constant 1 : index
    %c0_135 = arith.constant 0 : index
    %c0_136 = arith.constant 0 : index
    %c0_137 = arith.constant 0 : index
    %177 = vector.load %arg12[%c1_134, %c0_135, %c0_136, %c0_137] : memref<2x2x1x32xf32, #tpu.memory_space<vmem>>, vector<1x1x1x32xf32>
    %178 = vector.shape_cast %177 : vector<1x1x1x32xf32> to vector<1x32xf32>
    %cst_138 = arith.constant dense<0.000000e+00> : vector<8xf32>
    %179 = vector.multi_reduction <add>, %174, %cst_138 [1] : vector<8x32xf32> to vector<8xf32>
    %180 = vector.shape_cast %179 : vector<8xf32> to vector<8x1xf32>
    %cst_139 = arith.constant 3.200000e+01 : f32
    %181 = vector.broadcast %cst_139 : f32 to vector<8x1xf32>
    %182 = arith.divf %180, %181 : vector<8x1xf32>
    %183 = vector.broadcast %182 : vector<8x1xf32> to vector<8x32xf32>
    %184 = arith.subf %174, %183 : vector<8x32xf32>
    %185 = arith.mulf %184, %184 : vector<8x32xf32>
    %cst_140 = arith.constant dense<0.000000e+00> : vector<8xf32>
    %186 = vector.multi_reduction <add>, %185, %cst_140 [1] : vector<8x32xf32> to vector<8xf32>
    %187 = vector.shape_cast %186 : vector<8xf32> to vector<8x1xf32>
    %cst_141 = arith.constant 3.100000e+01 : f32
    %188 = vector.broadcast %cst_141 : f32 to vector<8x1xf32>
    %189 = arith.divf %187, %188 : vector<8x1xf32>
    %190 = math.sqrt %189 : vector<8x1xf32>
    %191 = vector.broadcast %182 : vector<8x1xf32> to vector<8x32xf32>
    %192 = arith.subf %174, %191 : vector<8x32xf32>
    %193 = vector.broadcast %176 : vector<1x32xf32> to vector<8x32xf32>
    %194 = arith.mulf %193, %192 : vector<8x32xf32>
    %cst_142 = arith.constant 9.99999997E-7 : f32
    %195 = vector.broadcast %cst_142 : f32 to vector<8x1xf32>
    %196 = arith.addf %190, %195 : vector<8x1xf32>
    %197 = vector.broadcast %196 : vector<8x1xf32> to vector<8x32xf32>
    %198 = arith.divf %194, %197 : vector<8x32xf32>
    %199 = vector.broadcast %178 : vector<1x32xf32> to vector<8x32xf32>
    %200 = arith.addf %198, %199 : vector<8x32xf32>
    %c1_143 = arith.constant 1 : index
    %c0_144 = arith.constant 0 : index
    %c0_145 = arith.constant 0 : index
    %c0_146 = arith.constant 0 : index
    %201 = vector.load %arg3[%c1_143, %c0_144, %c0_145, %c0_146] : memref<2x3x32x32xf32, #tpu.memory_space<vmem>>, vector<1x1x32x32xf32>
    %202 = vector.shape_cast %201 : vector<1x1x32x32xf32> to vector<32x32xf32>
    %cst_147 = arith.constant dense<0.000000e+00> : vector<8x32xf32>
    %203 = tpu.matmul %200, %202, %cst_147 {dimension_numbers = #tpu.dot_dimension_numbers<[1], [0], [0], [1], [0, 0, 1, 1], [], []>} : vector<8x32xf32>, vector<32x32xf32>, vector<8x32xf32> -> vector<8x32xf32>
    %c1_148 = arith.constant 1 : index
    %c0_149 = arith.constant 0 : index
    %c0_150 = arith.constant 0 : index
    %c0_151 = arith.constant 0 : index
    %204 = vector.load %arg4[%c1_148, %c0_149, %c0_150, %c0_151] : memref<2x3x1x32xf32, #tpu.memory_space<vmem>>, vector<1x1x1x32xf32>
    %205 = vector.shape_cast %204 : vector<1x1x1x32xf32> to vector<1x32xf32>
    %206 = vector.broadcast %205 : vector<1x32xf32> to vector<8x32xf32>
    %207 = arith.addf %203, %206 : vector<8x32xf32>
    %c1_152 = arith.constant 1 : index
    %c1_153 = arith.constant 1 : index
    %c0_154 = arith.constant 0 : index
    %c0_155 = arith.constant 0 : index
    %208 = vector.load %arg3[%c1_152, %c1_153, %c0_154, %c0_155] : memref<2x3x32x32xf32, #tpu.memory_space<vmem>>, vector<1x1x32x32xf32>
    %209 = vector.shape_cast %208 : vector<1x1x32x32xf32> to vector<32x32xf32>
    %cst_156 = arith.constant dense<0.000000e+00> : vector<8x32xf32>
    %210 = tpu.matmul %200, %209, %cst_156 {dimension_numbers = #tpu.dot_dimension_numbers<[1], [0], [0], [1], [0, 0, 1, 1], [], []>} : vector<8x32xf32>, vector<32x32xf32>, vector<8x32xf32> -> vector<8x32xf32>
    %c1_157 = arith.constant 1 : index
    %c1_158 = arith.constant 1 : index
    %c0_159 = arith.constant 0 : index
    %c0_160 = arith.constant 0 : index
    %211 = vector.load %arg4[%c1_157, %c1_158, %c0_159, %c0_160] : memref<2x3x1x32xf32, #tpu.memory_space<vmem>>, vector<1x1x1x32xf32>
    %212 = vector.shape_cast %211 : vector<1x1x1x32xf32> to vector<1x32xf32>
    %213 = vector.broadcast %212 : vector<1x32xf32> to vector<8x32xf32>
    %214 = arith.addf %210, %213 : vector<8x32xf32>
    %c1_161 = arith.constant 1 : index
    %c2_162 = arith.constant 2 : index
    %c0_163 = arith.constant 0 : index
    %c0_164 = arith.constant 0 : index
    %215 = vector.load %arg3[%c1_161, %c2_162, %c0_163, %c0_164] : memref<2x3x32x32xf32, #tpu.memory_space<vmem>>, vector<1x1x32x32xf32>
    %216 = vector.shape_cast %215 : vector<1x1x32x32xf32> to vector<32x32xf32>
    %cst_165 = arith.constant dense<0.000000e+00> : vector<8x32xf32>
    %217 = tpu.matmul %200, %216, %cst_165 {dimension_numbers = #tpu.dot_dimension_numbers<[1], [0], [0], [1], [0, 0, 1, 1], [], []>} : vector<8x32xf32>, vector<32x32xf32>, vector<8x32xf32> -> vector<8x32xf32>
    %c1_166 = arith.constant 1 : index
    %c2_167 = arith.constant 2 : index
    %c0_168 = arith.constant 0 : index
    %c0_169 = arith.constant 0 : index
    %218 = vector.load %arg4[%c1_166, %c2_167, %c0_168, %c0_169] : memref<2x3x1x32xf32, #tpu.memory_space<vmem>>, vector<1x1x1x32xf32>
    %219 = vector.shape_cast %218 : vector<1x1x1x32xf32> to vector<1x32xf32>
    %220 = vector.broadcast %219 : vector<1x32xf32> to vector<8x32xf32>
    %221 = arith.addf %217, %220 : vector<8x32xf32>
    %222 = vector.extract_strided_slice %207 {offsets = [0, 0], sizes = [8, 8], strides = [1, 1]} : vector<8x32xf32> to vector<8x8xf32>
    %c0_170 = arith.constant 0 : index
    %c0_171 = arith.constant 0 : index
    %c0_172 = arith.constant 0 : index
    %223 = vector.load %arg16[%c0_170, %c0_171, %c0_172] : memref<4x8x8xf32, #tpu.memory_space<vmem>>, vector<1x8x8xf32>
    %224 = vector.shape_cast %223 : vector<1x8x8xf32> to vector<8x8xf32>
    %225 = vector.shape_cast %222 : vector<8x8xf32> to vector<1x8x8xf32>
    tpu.vector_store %arg16[%c0_170, %c0_171, %c0_172], %225 {strides = array<i32>} : memref<4x8x8xf32, #tpu.memory_space<vmem>>, vector<1x8x8xf32>,
    %226 = vector.extract_strided_slice %214 {offsets = [0, 0], sizes = [8, 8], strides = [1, 1]} : vector<8x32xf32> to vector<8x8xf32>
    %c0_173 = arith.constant 0 : index
    %c0_174 = arith.constant 0 : index
    %c0_175 = arith.constant 0 : index
    %227 = vector.load %arg17[%c0_173, %c0_174, %c0_175] : memref<4x8x8xf32, #tpu.memory_space<vmem>>, vector<1x8x8xf32>
    %228 = vector.shape_cast %227 : vector<1x8x8xf32> to vector<8x8xf32>
    %229 = vector.shape_cast %226 : vector<8x8xf32> to vector<1x8x8xf32>
    tpu.vector_store %arg17[%c0_173, %c0_174, %c0_175], %229 {strides = array<i32>} : memref<4x8x8xf32, #tpu.memory_space<vmem>>, vector<1x8x8xf32>,
    %230 = vector.extract_strided_slice %221 {offsets = [0, 0], sizes = [8, 8], strides = [1, 1]} : vector<8x32xf32> to vector<8x8xf32>
    %c0_176 = arith.constant 0 : index
    %c0_177 = arith.constant 0 : index
    %c0_178 = arith.constant 0 : index
    %231 = vector.load %arg18[%c0_176, %c0_177, %c0_178] : memref<4x8x8xf32, #tpu.memory_space<vmem>>, vector<1x8x8xf32>
    %232 = vector.shape_cast %231 : vector<1x8x8xf32> to vector<8x8xf32>
    %233 = vector.shape_cast %230 : vector<8x8xf32> to vector<1x8x8xf32>
    tpu.vector_store %arg18[%c0_176, %c0_177, %c0_178], %233 {strides = array<i32>} : memref<4x8x8xf32, #tpu.memory_space<vmem>>, vector<1x8x8xf32>,
    %234 = vector.extract_strided_slice %207 {offsets = [0, 8], sizes = [8, 8], strides = [1, 1]} : vector<8x32xf32> to vector<8x8xf32>
    %c1_179 = arith.constant 1 : index
    %c0_180 = arith.constant 0 : index
    %c0_181 = arith.constant 0 : index
    %235 = vector.load %arg16[%c1_179, %c0_180, %c0_181] : memref<4x8x8xf32, #tpu.memory_space<vmem>>, vector<1x8x8xf32>
    %236 = vector.shape_cast %235 : vector<1x8x8xf32> to vector<8x8xf32>
    %237 = vector.shape_cast %234 : vector<8x8xf32> to vector<1x8x8xf32>
    tpu.vector_store %arg16[%c1_179, %c0_180, %c0_181], %237 {strides = array<i32>} : memref<4x8x8xf32, #tpu.memory_space<vmem>>, vector<1x8x8xf32>,
    %238 = vector.extract_strided_slice %214 {offsets = [0, 8], sizes = [8, 8], strides = [1, 1]} : vector<8x32xf32> to vector<8x8xf32>
    %c1_182 = arith.constant 1 : index
    %c0_183 = arith.constant 0 : index
    %c0_184 = arith.constant 0 : index
    %239 = vector.load %arg17[%c1_182, %c0_183, %c0_184] : memref<4x8x8xf32, #tpu.memory_space<vmem>>, vector<1x8x8xf32>
    %240 = vector.shape_cast %239 : vector<1x8x8xf32> to vector<8x8xf32>
    %241 = vector.shape_cast %238 : vector<8x8xf32> to vector<1x8x8xf32>
    tpu.vector_store %arg17[%c1_182, %c0_183, %c0_184], %241 {strides = array<i32>} : memref<4x8x8xf32, #tpu.memory_space<vmem>>, vector<1x8x8xf32>,
    %242 = vector.extract_strided_slice %221 {offsets = [0, 8], sizes = [8, 8], strides = [1, 1]} : vector<8x32xf32> to vector<8x8xf32>
    %c1_185 = arith.constant 1 : index
    %c0_186 = arith.constant 0 : index
    %c0_187 = arith.constant 0 : index
    %243 = vector.load %arg18[%c1_185, %c0_186, %c0_187] : memref<4x8x8xf32, #tpu.memory_space<vmem>>, vector<1x8x8xf32>
    %244 = vector.shape_cast %243 : vector<1x8x8xf32> to vector<8x8xf32>
    %245 = vector.shape_cast %242 : vector<8x8xf32> to vector<1x8x8xf32>
    tpu.vector_store %arg18[%c1_185, %c0_186, %c0_187], %245 {strides = array<i32>} : memref<4x8x8xf32, #tpu.memory_space<vmem>>, vector<1x8x8xf32>,
    %246 = vector.extract_strided_slice %207 {offsets = [0, 16], sizes = [8, 8], strides = [1, 1]} : vector<8x32xf32> to vector<8x8xf32>
    %c2_188 = arith.constant 2 : index
    %c0_189 = arith.constant 0 : index
    %c0_190 = arith.constant 0 : index
    %247 = vector.load %arg16[%c2_188, %c0_189, %c0_190] : memref<4x8x8xf32, #tpu.memory_space<vmem>>, vector<1x8x8xf32>
    %248 = vector.shape_cast %247 : vector<1x8x8xf32> to vector<8x8xf32>
    %249 = vector.shape_cast %246 : vector<8x8xf32> to vector<1x8x8xf32>
    tpu.vector_store %arg16[%c2_188, %c0_189, %c0_190], %249 {strides = array<i32>} : memref<4x8x8xf32, #tpu.memory_space<vmem>>, vector<1x8x8xf32>,
    %250 = vector.extract_strided_slice %214 {offsets = [0, 16], sizes = [8, 8], strides = [1, 1]} : vector<8x32xf32> to vector<8x8xf32>
    %c2_191 = arith.constant 2 : index
    %c0_192 = arith.constant 0 : index
    %c0_193 = arith.constant 0 : index
    %251 = vector.load %arg17[%c2_191, %c0_192, %c0_193] : memref<4x8x8xf32, #tpu.memory_space<vmem>>, vector<1x8x8xf32>
    %252 = vector.shape_cast %251 : vector<1x8x8xf32> to vector<8x8xf32>
    %253 = vector.shape_cast %250 : vector<8x8xf32> to vector<1x8x8xf32>
    tpu.vector_store %arg17[%c2_191, %c0_192, %c0_193], %253 {strides = array<i32>} : memref<4x8x8xf32, #tpu.memory_space<vmem>>, vector<1x8x8xf32>,
    %254 = vector.extract_strided_slice %221 {offsets = [0, 16], sizes = [8, 8], strides = [1, 1]} : vector<8x32xf32> to vector<8x8xf32>
    %c2_194 = arith.constant 2 : index
    %c0_195 = arith.constant 0 : index
    %c0_196 = arith.constant 0 : index
    %255 = vector.load %arg18[%c2_194, %c0_195, %c0_196] : memref<4x8x8xf32, #tpu.memory_space<vmem>>, vector<1x8x8xf32>
    %256 = vector.shape_cast %255 : vector<1x8x8xf32> to vector<8x8xf32>
    %257 = vector.shape_cast %254 : vector<8x8xf32> to vector<1x8x8xf32>
    tpu.vector_store %arg18[%c2_194, %c0_195, %c0_196], %257 {strides = array<i32>} : memref<4x8x8xf32, #tpu.memory_space<vmem>>, vector<1x8x8xf32>,
    %258 = vector.extract_strided_slice %207 {offsets = [0, 24], sizes = [8, 8], strides = [1, 1]} : vector<8x32xf32> to vector<8x8xf32>
    %c3_197 = arith.constant 3 : index
    %c0_198 = arith.constant 0 : index
    %c0_199 = arith.constant 0 : index
    %259 = vector.load %arg16[%c3_197, %c0_198, %c0_199] : memref<4x8x8xf32, #tpu.memory_space<vmem>>, vector<1x8x8xf32>
    %260 = vector.shape_cast %259 : vector<1x8x8xf32> to vector<8x8xf32>
    %261 = vector.shape_cast %258 : vector<8x8xf32> to vector<1x8x8xf32>
    tpu.vector_store %arg16[%c3_197, %c0_198, %c0_199], %261 {strides = array<i32>} : memref<4x8x8xf32, #tpu.memory_space<vmem>>, vector<1x8x8xf32>,
    %262 = vector.extract_strided_slice %214 {offsets = [0, 24], sizes = [8, 8], strides = [1, 1]} : vector<8x32xf32> to vector<8x8xf32>
    %c3_200 = arith.constant 3 : index
    %c0_201 = arith.constant 0 : index
    %c0_202 = arith.constant 0 : index
    %263 = vector.load %arg17[%c3_200, %c0_201, %c0_202] : memref<4x8x8xf32, #tpu.memory_space<vmem>>, vector<1x8x8xf32>
    %264 = vector.shape_cast %263 : vector<1x8x8xf32> to vector<8x8xf32>
    %265 = vector.shape_cast %262 : vector<8x8xf32> to vector<1x8x8xf32>
    tpu.vector_store %arg17[%c3_200, %c0_201, %c0_202], %265 {strides = array<i32>} : memref<4x8x8xf32, #tpu.memory_space<vmem>>, vector<1x8x8xf32>,
    %266 = vector.extract_strided_slice %221 {offsets = [0, 24], sizes = [8, 8], strides = [1, 1]} : vector<8x32xf32> to vector<8x8xf32>
    %c3_203 = arith.constant 3 : index
    %c0_204 = arith.constant 0 : index
    %c0_205 = arith.constant 0 : index
    %267 = vector.load %arg18[%c3_203, %c0_204, %c0_205] : memref<4x8x8xf32, #tpu.memory_space<vmem>>, vector<1x8x8xf32>
    %268 = vector.shape_cast %267 : vector<1x8x8xf32> to vector<8x8xf32>
    %269 = vector.shape_cast %266 : vector<8x8xf32> to vector<1x8x8xf32>
    tpu.vector_store %arg18[%c3_203, %c0_204, %c0_205], %269 {strides = array<i32>} : memref<4x8x8xf32, #tpu.memory_space<vmem>>, vector<1x8x8xf32>,
    %c0_206 = arith.constant 0 : index
    %c0_207 = arith.constant 0 : index
    %c0_208 = arith.constant 0 : index
    %270 = vector.load %arg16[%c0_206, %c0_207, %c0_208] : memref<4x8x8xf32, #tpu.memory_space<vmem>>, vector<4x8x8xf32>
    %c0_209 = arith.constant 0 : index
    %c0_210 = arith.constant 0 : index
    %c0_211 = arith.constant 0 : index
    %271 = vector.load %arg17[%c0_209, %c0_210, %c0_211] : memref<4x8x8xf32, #tpu.memory_space<vmem>>, vector<4x8x8xf32>
    %c0_212 = arith.constant 0 : index
    %c0_213 = arith.constant 0 : index
    %c0_214 = arith.constant 0 : index
    %272 = vector.load %arg18[%c0_212, %c0_213, %c0_214] : memref<4x8x8xf32, #tpu.memory_space<vmem>>, vector<4x8x8xf32>
    %cst_215 = arith.constant dense<0.000000e+00> : vector<4x8x8xf32>
    %273 = tpu.matmul %270, %271, %cst_215 {dimension_numbers = #tpu.dot_dimension_numbers<[2], [2], [1], [1], [0, 0, 0, 1, 1, 1], [0], [0]>} : vector<4x8x8xf32>, vector<4x8x8xf32>, vector<4x8x8xf32> -> vector<4x8x8xf32>
    %cst_216 = arith.constant 0.353553385 : f32
    %274 = vector.broadcast %cst_216 : f32 to vector<4x8x8xf32>
    %275 = arith.mulf %273, %274 : vector<4x8x8xf32>
    %cst_217 = arith.constant -1.000000e+09 : f32
    %276 = vector.shape_cast %6 : vector<1x8x8xi1> to vector<1x8x8xi1>
    %277 = vector.broadcast %276 : vector<1x8x8xi1> to vector<4x8x8xi1>
    %278 = vector.broadcast %cst_217 : f32 to vector<4x8x8xf32>
    %279 = arith.select %277, %278, %275 : vector<4x8x8xi1>, vector<4x8x8xf32>
    %cst_218 = arith.constant dense<0xFF800000> : vector<4x8xf32>
    %280 = vector.multi_reduction <maximumf>, %279, %cst_218 [2] : vector<4x8x8xf32> to vector<4x8xf32>
    %281 = vector.shape_cast %280 : vector<4x8xf32> to vector<4x8x1xf32>
    %282 = vector.broadcast %281 : vector<4x8x1xf32> to vector<4x8x8xf32>
    %283 = arith.subf %279, %282 : vector<4x8x8xf32>
    %284 = math.exp %283 : vector<4x8x8xf32>
    %cst_219 = arith.constant dense<0.000000e+00> : vector<4x8xf32>
    %285 = vector.multi_reduction <add>, %284, %cst_219 [2] : vector<4x8x8xf32> to vector<4x8xf32>
    %286 = vector.shape_cast %285 : vector<4x8xf32> to vector<4x8x1xf32>
    %287 = tpu.reciprocal %286 : vector<4x8x1xf32> -> vector<4x8x1xf32>
    %288 = vector.broadcast %287 : vector<4x8x1xf32> to vector<4x8x8xf32>
    %289 = arith.mulf %284, %288 : vector<4x8x8xf32>
    %cst_220 = arith.constant dense<0.000000e+00> : vector<4x8x8xf32>
    %290 = tpu.matmul %289, %272, %cst_220 {dimension_numbers = #tpu.dot_dimension_numbers<[2], [1], [1], [2], [0, 0, 0, 1, 1, 2], [0], [0]>} : vector<4x8x8xf32>, vector<4x8x8xf32>, vector<4x8x8xf32> -> vector<4x8x8xf32>
    %c1_221 = arith.constant 1 : index
    %c0_222 = arith.constant 0 : index
    %c0_223 = arith.constant 0 : index
    %c0_224 = arith.constant 0 : index
    %291 = vector.load %arg5[%c1_221, %c0_222, %c0_223, %c0_224] : memref<2x4x8x32xf32, #tpu.memory_space<vmem>>, vector<1x4x8x32xf32>
    %292 = vector.shape_cast %291 : vector<1x4x8x32xf32> to vector<4x8x32xf32>
    %cst_225 = arith.constant dense<0.000000e+00> : vector<4x8x32xf32>
    %293 = tpu.matmul %290, %292, %cst_225 {dimension_numbers = #tpu.dot_dimension_numbers<[2], [1], [1], [2], [0, 0, 0, 1, 1, 2], [0], [0]>} : vector<4x8x8xf32>, vector<4x8x32xf32>, vector<4x8x32xf32> -> vector<4x8x32xf32>
    %cst_226 = arith.constant dense<0.000000e+00> : vector<8x32xf32>
    %294 = vector.multi_reduction <add>, %293, %cst_226 [0] : vector<4x8x32xf32> to vector<8x32xf32>
    %295 = arith.addf %174, %294 : vector<8x32xf32>
    %c1_227 = arith.constant 1 : index
    %c0_228 = arith.constant 0 : index
    %c0_229 = arith.constant 0 : index
    %296 = vector.load %arg6[%c1_227, %c0_228, %c0_229] : memref<2x1x32xf32, #tpu.memory_space<vmem>>, vector<1x1x32xf32>
    %297 = vector.shape_cast %296 : vector<1x1x32xf32> to vector<1x32xf32>
    %298 = vector.broadcast %297 : vector<1x32xf32> to vector<8x32xf32>
    %299 = arith.addf %295, %298 : vector<8x32xf32>
    %c1_230 = arith.constant 1 : index
    %c1_231 = arith.constant 1 : index
    %c0_232 = arith.constant 0 : index
    %c0_233 = arith.constant 0 : index
    %300 = vector.load %arg11[%c1_230, %c1_231, %c0_232, %c0_233] : memref<2x2x1x32xf32, #tpu.memory_space<vmem>>, vector<1x1x1x32xf32>
    %301 = vector.shape_cast %300 : vector<1x1x1x32xf32> to vector<1x32xf32>
    %c1_234 = arith.constant 1 : index
    %c1_235 = arith.constant 1 : index
    %c0_236 = arith.constant 0 : index
    %c0_237 = arith.constant 0 : index
    %302 = vector.load %arg12[%c1_234, %c1_235, %c0_236, %c0_237] : memref<2x2x1x32xf32, #tpu.memory_space<vmem>>, vector<1x1x1x32xf32>
    %303 = vector.shape_cast %302 : vector<1x1x1x32xf32> to vector<1x32xf32>
    %cst_238 = arith.constant dense<0.000000e+00> : vector<8xf32>
    %304 = vector.multi_reduction <add>, %299, %cst_238 [1] : vector<8x32xf32> to vector<8xf32>
    %305 = vector.shape_cast %304 : vector<8xf32> to vector<8x1xf32>
    %cst_239 = arith.constant 3.200000e+01 : f32
    %306 = vector.broadcast %cst_239 : f32 to vector<8x1xf32>
    %307 = arith.divf %305, %306 : vector<8x1xf32>
    %308 = vector.broadcast %307 : vector<8x1xf32> to vector<8x32xf32>
    %309 = arith.subf %299, %308 : vector<8x32xf32>
    %310 = arith.mulf %309, %309 : vector<8x32xf32>
    %cst_240 = arith.constant dense<0.000000e+00> : vector<8xf32>
    %311 = vector.multi_reduction <add>, %310, %cst_240 [1] : vector<8x32xf32> to vector<8xf32>
    %312 = vector.shape_cast %311 : vector<8xf32> to vector<8x1xf32>
    %cst_241 = arith.constant 3.100000e+01 : f32
    %313 = vector.broadcast %cst_241 : f32 to vector<8x1xf32>
    %314 = arith.divf %312, %313 : vector<8x1xf32>
    %315 = math.sqrt %314 : vector<8x1xf32>
    %316 = vector.broadcast %307 : vector<8x1xf32> to vector<8x32xf32>
    %317 = arith.subf %299, %316 : vector<8x32xf32>
    %318 = vector.broadcast %301 : vector<1x32xf32> to vector<8x32xf32>
    %319 = arith.mulf %318, %317 : vector<8x32xf32>
    %cst_242 = arith.constant 9.99999997E-7 : f32
    %320 = vector.broadcast %cst_242 : f32 to vector<8x1xf32>
    %321 = arith.addf %315, %320 : vector<8x1xf32>
    %322 = vector.broadcast %321 : vector<8x1xf32> to vector<8x32xf32>
    %323 = arith.divf %319, %322 : vector<8x32xf32>
    %324 = vector.broadcast %303 : vector<1x32xf32> to vector<8x32xf32>
    %325 = arith.addf %323, %324 : vector<8x32xf32>
    %c1_243 = arith.constant 1 : index
    %c0_244 = arith.constant 0 : index
    %c0_245 = arith.constant 0 : index
    %326 = vector.load %arg7[%c1_243, %c0_244, %c0_245] : memref<2x32x64xf32, #tpu.memory_space<vmem>>, vector<1x32x64xf32>
    %327 = vector.shape_cast %326 : vector<1x32x64xf32> to vector<32x64xf32>
    %cst_246 = arith.constant dense<0.000000e+00> : vector<8x64xf32>
    %328 = tpu.matmul %325, %327, %cst_246 {dimension_numbers = #tpu.dot_dimension_numbers<[1], [0], [0], [1], [0, 0, 1, 1], [], []>} : vector<8x32xf32>, vector<32x64xf32>, vector<8x64xf32> -> vector<8x64xf32>
    %c1_247 = arith.constant 1 : index
    %c0_248 = arith.constant 0 : index
    %c0_249 = arith.constant 0 : index
    %329 = vector.load %arg8[%c1_247, %c0_248, %c0_249] : memref<2x1x64xf32, #tpu.memory_space<vmem>>, vector<1x1x64xf32>
    %330 = vector.shape_cast %329 : vector<1x1x64xf32> to vector<1x64xf32>
    %331 = vector.broadcast %330 : vector<1x64xf32> to vector<8x64xf32>
    %332 = arith.addf %328, %331 : vector<8x64xf32>
    %cst_250 = arith.constant 0.000000e+00 : f32
    %333 = vector.broadcast %cst_250 : f32 to vector<8x64xf32>
    %334 = arith.maximumf %332, %333 : vector<8x64xf32>
    %c1_251 = arith.constant 1 : index
    %c0_252 = arith.constant 0 : index
    %c0_253 = arith.constant 0 : index
    %335 = vector.load %arg9[%c1_251, %c0_252, %c0_253] : memref<2x64x32xf32, #tpu.memory_space<vmem>>, vector<1x64x32xf32>
    %336 = vector.shape_cast %335 : vector<1x64x32xf32> to vector<64x32xf32>
    %cst_254 = arith.constant dense<0.000000e+00> : vector<8x32xf32>
    %337 = tpu.matmul %334, %336, %cst_254 {dimension_numbers = #tpu.dot_dimension_numbers<[1], [0], [0], [1], [0, 0, 1, 1], [], []>} : vector<8x64xf32>, vector<64x32xf32>, vector<8x32xf32> -> vector<8x32xf32>
    %338 = arith.addf %299, %337 : vector<8x32xf32>
    %c1_255 = arith.constant 1 : index
    %c0_256 = arith.constant 0 : index
    %c0_257 = arith.constant 0 : index
    %339 = vector.load %arg10[%c1_255, %c0_256, %c0_257] : memref<2x1x32xf32, #tpu.memory_space<vmem>>, vector<1x1x32xf32>
    %340 = vector.shape_cast %339 : vector<1x1x32xf32> to vector<1x32xf32>
    %341 = vector.broadcast %340 : vector<1x32xf32> to vector<8x32xf32>
    %342 = arith.addf %338, %341 : vector<8x32xf32>
    %c0_258 = arith.constant 0 : index
    %c0_259 = arith.constant 0 : index
    %343 = vector.load %arg13[%c0_258, %c0_259] : memref<1x32xf32, #tpu.memory_space<vmem>>, vector<1x32xf32>
    %c0_260 = arith.constant 0 : index
    %c0_261 = arith.constant 0 : index
    %344 = vector.load %arg14[%c0_260, %c0_261] : memref<1x32xf32, #tpu.memory_space<vmem>>, vector<1x32xf32>
    %cst_262 = arith.constant dense<0.000000e+00> : vector<8xf32>
    %345 = vector.multi_reduction <add>, %342, %cst_262 [1] : vector<8x32xf32> to vector<8xf32>
    %346 = vector.shape_cast %345 : vector<8xf32> to vector<8x1xf32>
    %cst_263 = arith.constant 3.200000e+01 : f32
    %347 = vector.broadcast %cst_263 : f32 to vector<8x1xf32>
    %348 = arith.divf %346, %347 : vector<8x1xf32>
    %349 = vector.broadcast %348 : vector<8x1xf32> to vector<8x32xf32>
    %350 = arith.subf %342, %349 : vector<8x32xf32>
    %351 = arith.mulf %350, %350 : vector<8x32xf32>
    %cst_264 = arith.constant dense<0.000000e+00> : vector<8xf32>
    %352 = vector.multi_reduction <add>, %351, %cst_264 [1] : vector<8x32xf32> to vector<8xf32>
    %353 = vector.shape_cast %352 : vector<8xf32> to vector<8x1xf32>
    %cst_265 = arith.constant 3.100000e+01 : f32
    %354 = vector.broadcast %cst_265 : f32 to vector<8x1xf32>
    %355 = arith.divf %353, %354 : vector<8x1xf32>
    %356 = math.sqrt %355 : vector<8x1xf32>
    %357 = vector.broadcast %348 : vector<8x1xf32> to vector<8x32xf32>
    %358 = arith.subf %342, %357 : vector<8x32xf32>
    %359 = vector.broadcast %343 : vector<1x32xf32> to vector<8x32xf32>
    %360 = arith.mulf %359, %358 : vector<8x32xf32>
    %cst_266 = arith.constant 9.99999997E-7 : f32
    %361 = vector.broadcast %cst_266 : f32 to vector<8x1xf32>
    %362 = arith.addf %356, %361 : vector<8x1xf32>
    %363 = vector.broadcast %362 : vector<8x1xf32> to vector<8x32xf32>
    %364 = arith.divf %360, %363 : vector<8x32xf32>
    %365 = vector.broadcast %344 : vector<1x32xf32> to vector<8x32xf32>
    %366 = arith.addf %364, %365 : vector<8x32xf32>
    %c0_267 = arith.constant 0 : index
    %c0_268 = arith.constant 0 : index
    %c0_269 = arith.constant 0 : index
    %367 = vector.load %arg15[%c0_267, %c0_268, %c0_269] : memref<1x8x32xf32, #tpu.memory_space<vmem>>, vector<1x8x32xf32>
    %368 = vector.shape_cast %367 : vector<1x8x32xf32> to vector<8x32xf32>
    %369 = vector.shape_cast %366 : vector<8x32xf32> to vector<1x8x32xf32>
    tpu.vector_store %arg15[%c0_267, %c0_268, %c0_269], %369 {strides = array<i32>} : memref<1x8x32xf32, #tpu.memory_space<vmem>>, vector<1x8x32xf32>,
    return
  }
  func.func @transform_0(%arg0: i32) -> (i32, i32, i32) {
    %c0_i32 = arith.constant 0 : i32
    %c0_i32_0 = arith.constant 0 : i32
    %c0_i32_1 = arith.constant 0 : i32
    return %arg0, %c0_i32, %c0_i32_0 : i32, i32, i32
  }
  func.func @transform_1(%arg0: i32) -> (i32, i32, i32) {
    %c0_i32 = arith.constant 0 : i32
    %c0_i32_0 = arith.constant 0 : i32
    %c0_i32_1 = arith.constant 0 : i32
    return %arg0, %c0_i32, %c0_i32_0 : i32, i32, i32
  }
  func.func @transform_2(%arg0: i32) -> (i32, i32, i32, i32) {
    %c0_i32 = arith.constant 0 : i32
    %c0_i32_0 = arith.constant 0 : i32
    %c0_i32_1 = arith.constant 0 : i32
    %c0_i32_2 = arith.constant 0 : i32
    %c0_i32_3 = arith.constant 0 : i32
    return %c0_i32, %c0_i32_0, %c0_i32_1, %c0_i32_2 : i32, i32, i32, i32
  }
  func.func @transform_3(%arg0: i32) -> (i32, i32, i32, i32) {
    %c0_i32 = arith.constant 0 : i32
    %c0_i32_0 = arith.constant 0 : i32
    %c0_i32_1 = arith.constant 0 : i32
    %c0_i32_2 = arith.constant 0 : i32
    %c0_i32_3 = arith.constant 0 : i32
    return %c0_i32, %c0_i32_0, %c0_i32_1, %c0_i32_2 : i32, i32, i32, i32
  }
  func.func @transform_4(%arg0: i32) -> (i32, i32, i32, i32) {
    %c0_i32 = arith.constant 0 : i32
    %c0_i32_0 = arith.constant 0 : i32
    %c0_i32_1 = arith.constant 0 : i32
    %c0_i32_2 = arith.constant 0 : i32
    %c0_i32_3 = arith.constant 0 : i32
    return %c0_i32, %c0_i32_0, %c0_i32_1, %c0_i32_2 : i32, i32, i32, i32
  }
  func.func @transform_5(%arg0: i32) -> (i32, i32, i32) {
    %c0_i32 = arith.constant 0 : i32
    %c0_i32_0 = arith.constant 0 : i32
    %c0_i32_1 = arith.constant 0 : i32
    %c0_i32_2 = arith.constant 0 : i32
    return %c0_i32, %c0_i32_0, %c0_i32_1 : i32, i32, i32
  }
  func.func @transform_6(%arg0: i32) -> (i32, i32, i32) {
    %c0_i32 = arith.constant 0 : i32
    %c0_i32_0 = arith.constant 0 : i32
    %c0_i32_1 = arith.constant 0 : i32
    %c0_i32_2 = arith.constant 0 : i32
    return %c0_i32, %c0_i32_0, %c0_i32_1 : i32, i32, i32
  }
  func.func @transform_7(%arg0: i32) -> (i32, i32, i32) {
    %c0_i32 = arith.constant 0 : i32
    %c0_i32_0 = arith.constant 0 : i32
    %c0_i32_1 = arith.constant 0 : i32
    %c0_i32_2 = arith.constant 0 : i32
    return %c0_i32, %c0_i32_0, %c0_i32_1 : i32, i32, i32
  }
  func.func @transform_8(%arg0: i32) -> (i32, i32, i32) {
    %c0_i32 = arith.constant 0 : i32
    %c0_i32_0 = arith.constant 0 : i32
    %c0_i32_1 = arith.constant 0 : i32
    %c0_i32_2 = arith.constant 0 : i32
    return %c0_i32, %c0_i32_0, %c0_i32_1 : i32, i32, i32
  }
  func.func @transform_9(%arg0: i32) -> (i32, i32, i32) {
    %c0_i32 = arith.constant 0 : i32
    %c0_i32_0 = arith.constant 0 : i32
    %c0_i32_1 = arith.constant 0 : i32
    %c0_i32_2 = arith.constant 0 : i32
    return %c0_i32, %c0_i32_0, %c0_i32_1 : i32, i32, i32
  }
  func.func @transform_10(%arg0: i32) -> (i32, i32, i32, i32) {
    %c0_i32 = arith.constant 0 : i32
    %c0_i32_0 = arith.constant 0 : i32
    %c0_i32_1 = arith.constant 0 : i32
    %c0_i32_2 = arith.constant 0 : i32
    %c0_i32_3 = arith.constant 0 : i32
    return %c0_i32, %c0_i32_0, %c0_i32_1, %c0_i32_2 : i32, i32, i32, i32
  }
  func.func @transform_11(%arg0: i32) -> (i32, i32, i32, i32) {
    %c0_i32 = arith.constant 0 : i32
    %c0_i32_0 = arith.constant 0 : i32
    %c0_i32_1 = arith.constant 0 : i32
    %c0_i32_2 = arith.constant 0 : i32
    %c0_i32_3 = arith.constant 0 : i32
    return %c0_i32, %c0_i32_0, %c0_i32_1, %c0_i32_2 : i32, i32, i32, i32
  }
  func.func @transform_12(%arg0: i32) -> (i32, i32) {
    %c0_i32 = arith.constant 0 : i32
    %c0_i32_0 = arith.constant 0 : i32
    %c0_i32_1 = arith.constant 0 : i32
    return %c0_i32, %c0_i32_0 : i32, i32
  }
  func.func @transform_13(%arg0: i32) -> (i32, i32) {
    %c0_i32 = arith.constant 0 : i32
    %c0_i32_0 = arith.constant 0 : i32
    %c0_i32_1 = arith.constant 0 : i32
    return %c0_i32, %c0_i32_0 : i32, i32
  }
  func.func @transform_14(%arg0: i32) -> (i32, i32, i32) {
    %c0_i32 = arith.constant 0 : i32
    %c0_i32_0 = arith.constant 0 : i32
    %c0_i32_1 = arith.constant 0 : i32
    return %arg0, %c0_i32, %c0_i32_0 : i32, i32, i32
  }
}

</mosaic_0001>

<bundles_post_ra>
// kernel: tpu_custom_call.1
= control target key start
LH: loop header
LB: loop body
LE: loop exit
PB: predicated region body
PF: predicated region fallthrough
CT: control target
= control target key end

     0   :  { %s5511_s0 = inlined_call_operand.hbm [shape: f32[2,8,32], index: 0, kind: input, shape index: {}]   ;;  %s5512_s1 = inlined_call_operand.hbm [shape: f32[2,8,8], index: 1, kind: input, shape index: {}]   ;;  %s5513_s2 = inlined_call_operand.vmem [shape: f32[2,3,32,32], index: 2, kind: input, shape index: {}]   ;;  %s5514_s3 = inlined_call_operand.hbm [shape: f32[2,3,1,32], index: 3, kind: input, shape index: {}]   ;;  %s5515_s4 = inlined_call_operand.hbm [shape: f32[2,4,8,32], index: 4, kind: input, shape index: {}]   ;;  %s5516_s5 = inlined_call_operand.vmem [shape: f32[2,1,32], index: 5, kind: input, shape index: {}]   ;;  %s5517_s6 = inlined_call_operand.hbm [shape: f32[2,32,64], index: 6, kind: input, shape index: {}]   ;;  %s5518_s7 = inlined_call_operand.hbm [shape: f32[2,1,64], index: 7, kind: input, shape index: {}]   ;;  %s5519_s8 = inlined_call_operand.vmem [shape: f32[2,64,32], index: 8, kind: input, shape index: {}]   ;;  %s5520_s9 = inlined_call_operand.vmem [shape: f32[2,1,32], index: 9, kind: input, shape index: {}]   ;;  %s5521_s10 = inlined_call_operand.vmem [shape: f32[2,2,1,32], index: 10, kind: input, shape index: {}]   ;;  %s5522_s11 = inlined_call_operand.vmem [shape: f32[2,2,1,32], index: 11, kind: input, shape index: {}]   ;;  %s5523_s12 = inlined_call_operand.vmem [shape: f32[1,32], index: 12, kind: input, shape index: {}]   ;;  %s5524_s13 = inlined_call_operand.vmem [shape: f32[1,32], index: 13, kind: input, shape index: {}]   ;;  %s5525_s14 = inlined_call_operand.hbm [shape: f32[2,8,32], index: 14, kind: output, shape index: {}]  }
   0x1   :  { %5537 = sst [smem:[#allocation28_spill]] %s5514_s3 }
   0x2   :  { %5538 = sst [smem:[#allocation29_spill]] %s5515_s4 }
   0x3   :  { %5539 = sst [smem:[#allocation30_spill]] %s5517_s6 }
   0x4   :  { %5540 = sst [smem:[#allocation31_spill]] %s5518_s7 }
   0x5   :  { %5541 = sst [smem:[#allocation32_spill]] %s5524_s13 }
   0x6   :  { %5542 = sst [smem:[#allocation33_spill]] %s5525_s14 }
   0x7   :  { %19 = vsyncpa [#allocation6], 0 }
   0x8   :  { %21 = vsyncpa [#allocation6 + $0x1], 0 }
   0x9   :  { %22 = vsyncpa [#allocation9], 0 }
   0xa   :  { %24 = vsyncpa [#allocation9 + $0x1], 0 }
   0xb   :  { %25 = vsyncpa [#allocation12], 0 }
   0xc   :  { %26 = vsyncpa [#allocation15], 0 }
   0xd   :  { %27 = vsyncpa [#allocation7], 0 }
   0xe   :  { %29 = vsyncpa [#allocation7 + $0x1], 0  ;;  %s4776_s29 = smov 0   ;;  %s4778_s30 = smov 0  }
   0xf   :  { %s4780_s15 = smov 0   ;;  %s4782_s16 = smov 0  }
  0x10 LB: > { %5543 = sst [smem:[#allocation23_spill]] %s4671_s29  ;;  %s4685_s17 = smov [#allocation10]   ;;  %s4683_s16 = sphi %s4782_s16, %s5575_s16   ;;  %s4679_s15 = sphi %s4780_s15, %s5577_s15   ;;  %s4675_s30 = sphi %s4778_s30, %s5579_s30   ;;  %s4671_s29 = sphi %s4776_s29, %s5578_s29  }
  0x11   : > { %5544 = sst [smem:[#allocation24_spill]] %s4679_s15  ;;  %s385_s18 = sshll.u32 %s4685_s17, 4  ;;  %s386_s18 = int_to_ptr.vmem [resolvable:$true] %s385_s18 }
  0x12   : > { %s4797_s19 = sadd.s32 4294967295, %s4683_s16   ;;  %p3816_p0 = scmp.ge.s32.totalorder %s4683_s16, 1 }
  0x13   : > { %p5533_p1 = scmp.eq.s32.totalorder %s4797_s19, 0  ;;  %p370_p2 = scmp.lt.s32.totalorder %s4683_s16, 3 }
  0x14   : > { %s4686_s21 = smov [#allocation11]   ;;  %s4687_s24 = smov [#allocation13]  }
  0x15   : > { %p4802_p3 = pnand %p3816_p0, %p370_p2  ;;  %s398_s22 = sshll.u32 %s4686_s21, 4  ;;  %s4815_s22 = int_to_ptr.vmem [resolvable:$true] %s398_s22 }
  0x16   : > { %s4817_s25 = sshll.u32 %s4687_s24, 4  ;;  %s4454_s26 = scalar_lea.vmem %s386_s18, 96  ;;  %s415_s25 = int_to_ptr.vmem [resolvable:$true] %s4817_s25 }
  0x17   : > { %s5545_s20 = scalar_select %p4802_p3, 1, 0 }
  0x18   : > { %p4312_p5 = pneg %p4802_p3  ;;  %p4455_p8 = scmp.ne.s32.totalorder %s386_s18, %s4454_s26 }
  0x19   : > { %p4462_p11 = scmp.lt.s32.totalorder %s386_s18, %s386_s18  ;;  %p4463_p12 = scmp.lt.s32.totalorder %s4454_s26, %s4454_s26 }
  0x1a   : > { %p4811_p6 = pnand %p4312_p5, %p5533_p1 }
  0x1b   : > { %p4464_p13 = por %p4463_p12, %p4462_p11 }
  0x1c   : > { %p4445_p7 = pneg %p4811_p6 }
  0x1e   : > { %p4457_p9 = pnand %p4455_p8, %p4445_p7 }
  0x20   : > { %p4458_p10 = pneg %p4457_p9 }
  0x22   : > { %p4465_p0 = pnand %p4464_p13, %p4458_p10 }
  0x24   : > { %4468 = shalt.err (!%p4465_p0)
}
  0x25   : > { %s5527_s27 = smov 16   ;;  %s4689_s28 = smov 1  }
  0x26   : > { %s5547_s3 = sld [smem:[#allocation28_spill]]  ;;  %s4480_s24 = scalar_lea.vmem %s4815_s22, 1024 }
  0x27   : > { %p4481_p2 = scmp.ne.s32.totalorder %s4815_s22, %s4480_s24  ;;  %p4488_p9 = scmp.lt.s32.totalorder %s4815_s22, %s4815_s22 }
  0x28   : > { %p4489_p10 = scmp.lt.s32.totalorder %s4480_s24, %s4480_s24 }
  0x29   : > { %p4483_p5 = pnand %p4481_p2, %p4445_p7 }
  0x2a   : > { %p4490_p11 = por %p4489_p10, %p4488_p9 }
  0x2b   : > { %p4484_p8 = pneg %p4483_p5 }
  0x2c   : > { %4315 = dma.hbm_to_vmem [thread:$0]  (!%p4811_p6), %s5547_s3, 96, %s386_s18, [#allocation9], %s5527_s27, %s5527_s27, %s4689_s28  }
  0x2d   : > { %p4491_p12 = pnand %p4490_p11, %p4484_p8 }
  0x2f   : > { %4494 = shalt.err (!%p4491_p12)
}
  0x30   : > { %s4690_s26 = smov 128   ;;  %s4691_s14 = smov 8  }
  0x31   : > { %s5548_s4 = sld [smem:[#allocation29_spill]]  ;;  %s4506_s21 = scalar_lea.vmem %s415_s25, 1024 }
  0x32   : > { %p4507_p13 = scmp.ne.s32.totalorder %s415_s25, %s4506_s21  ;;  %p4514_p5 = scmp.lt.s32.totalorder %s415_s25, %s415_s25 }
  0x33   : > { %p4515_p8 = scmp.lt.s32.totalorder %s4506_s21, %s4506_s21 }
  0x34   : > { %p4509_p0 = pnand %p4507_p13, %p4445_p7 }
  0x35   : > { %p4516_p9 = por %p4515_p8, %p4514_p5 }
  0x36   : > { %p4510_p2 = pneg %p4509_p0 }
  0x37   : > { %4318 = dma.hbm_to_vmem [thread:$0]  (!%p4811_p6), %s5548_s4, 1024, %s4815_s22, [#allocation12], %s4690_s26, %s4690_s26, %s4691_s14  }
  0x38   : > { %p4517_p10 = pnand %p4516_p9, %p4510_p2 }
  0x3a   : > { %4520 = shalt.err (!%p4517_p10)
}
  0x3b   : > { %s5549_s6 = sld [smem:[#allocation30_spill]]  ;;  %s4692_s22 = smov [#allocation14]  }
  0x3c   : > { %s427_s18 = sshll.u32 %s4692_s22, 4  ;;  %s428_s18 = int_to_ptr.vmem [resolvable:$true] %s427_s18 }
  0x3d   : > { %s4532_s17 = scalar_lea.vmem %s428_s18, 32  ;;  %p4540_p0 = scmp.lt.s32.totalorder %s428_s18, %s428_s18 }
  0x3e   : > { %p4533_p11 = scmp.ne.s32.totalorder %s428_s18, %s4532_s17  ;;  %p4541_p5 = scmp.lt.s32.totalorder %s4532_s17, %s4532_s17 }
  0x40   : > { %p4535_p12 = pnand %p4533_p11, %p4445_p7  ;;  %p4542_p2 = por %p4541_p5, %p4540_p0 }
  0x41   : > { %4321 = dma.hbm_to_vmem [thread:$0]  (!%p4811_p6), %s5549_s6, 1024, %s415_s25, [#allocation12], %s4690_s26, %s4690_s26, %s4691_s14  }
  0x42   : > { %p4536_p13 = pneg %p4535_p12 }
  0x44   : > { %p4543_p8 = pnand %p4542_p2, %p4536_p13 }
  0x46   : > { %4546 = shalt.err (!%p4543_p8)
}
  0x47   : > { %s5550_s27 = smov 16   ;;  %s5551_s7 = sld [smem:[#allocation31_spill]] }
  0x48   : > { %s3815_s23 = sadd.s32 4294967294, %s4683_s16   ;;  %s4867_s26 = sadd.s32 1, %s4683_s16  }
  0x49   : > { %5552 = sst [smem:[#allocation25_spill]] %s4867_s26  ;;  %s39_s21 = ssub.s32 %s4683_s16, %s4867_s26 }
  0x4a   : > { %s42_s24 = sadd.s32 1, %s4679_s15  ;;  %p40_p7 = scmp.eq.s32.totalorder %s39_s21, 0 }
  0x4b   : > { %p49_p9 = scmp.ne.s32.totalorder %s4679_s15, %s4675_s30  ;;  %p50_p10 = scmp.eq.s32.totalorder %s4683_s16, 0 }
  0x4c   : > { %p55_p11 = scmp.ne.s32.totalorder %s4675_s30, %s4671_s29  ;;  %p357_p13 = scmp.eq.s32.totalorder %s4797_s19, 1 }
  0x4d   : > { %4324 = dma.hbm_to_vmem [thread:$0]  (!%p4811_p6), %s5551_s7, 32, %s428_s18, [#allocation15], %s5550_s27, %s5550_s27, %s4689_s28  }
  0x4e   : > { %s4878_s22 = scalar_select %p40_p7, %s4679_s15, %s42_s24  }
  0x4f   : > { %p4880_p12 = por %p50_p10, %p49_p9  ;;  %p4886_p6 = por %p5533_p1, %p55_p11 }
  0x50   : > { %5553 = sst [smem:[#allocation26_spill]] %s4878_s22  ;;  %p363_p0 = scmp.eq.s32.totalorder %s3815_s23, 1 }
  0x51   : > { %s5555_s28 = scalar_select %p4886_p6, 1, 0 }
  0x52   : > { %p4340_p5 = scmp.lt.s32.totalorder %s4683_s16, 2  ;;  %s459_s18 = sand.u32 1, %s4679_s15  }
  0x53   : > { %p4893_p2 = por %p357_p13, %p49_p9  ;;  %p4897_p8 = por %p363_p0, %p55_p11 }
  0x54   : > { %s4901_s25 = sshll.u32 %s459_s18, 3  ;;  %s3823_s21 = sshll.u32 %s4683_s16, 7 }
  0x55   : > { %s5556_s27 = scalar_select %p4893_p2, 1, 0 }
  0x56   : > { %s5557_s14 = scalar_select %p4897_p8, 1, 0 }
  0x57   : > { %s4907_s4 = scalar_lea.hbm %s5511_s0, %s3823_s21  ;;  %s463_s23 = scalar_lea.vmem [#allocation5], %s4901_s25 }
  0x58   : > { %5558 = sst [smem:[#allocation27_spill]] %s5557_s14  ;;  %s470_s6 = sshll.u32 %s463_s23, 4  ;;  %s4910_s6 = int_to_ptr.vmem [resolvable:$true] %s470_s6 }
  0x59   : > { %p4914_p7 = pnand %p4340_p5, %p4880_p12  ;;  %s4921_s3 = scalar_lea.hbm %s5512_s1, %s3823_s21 }
  0x5a   : > { %s477_s24 = sand.u32 1, %s4683_s16   ;;  %s460_s26 = scalar_lea.sflag [#allocation6], %s459_s18 }
  0x5b   : > { %s4547_s14 = scalar_lea.hbm %s4907_s4, 128  ;;  %p4549_p10 = pneg %p4914_p7 }
  0x5c   : > { %p4548_p9 = scmp.ne.s32.totalorder %s4907_s4, %s4547_s14  ;;  %s4552_s29 = scalar_lea.hbm %s5511_s0, 256 }
  0x5d   : > { %p4553_p13 = scmp.lt.s32.totalorder %s4907_s4, %s5511_s0  ;;  %p4554_p0 = scmp.lt.s32.totalorder %s4552_s29, %s4547_s14 }
  0x5e   : > { %p4550_p11 = pnand %p4549_p10, %p4548_p9 }
  0x5f   : > { %p4555_p5 = por %p4554_p0, %p4553_p13 }
  0x60   : > { %p4551_p12 = pneg %p4550_p11 }
  0x62   : > { %p4556_p4 = pnand %p4555_p5, %p4551_p12 }
  0x64   : > { %4559 = shalt.err (!%p4556_p4)
}
  0x65   : > { %s4560_s22 = scalar_lea.vmem %s4910_s6, 128  ;;  %s4693_s18 = smov [#allocation5]  }
  0x66   : > { %p4561_p1 = scmp.ne.s32.totalorder %s4910_s6, %s4560_s22  ;;  %s4565_s21 = sshll.u32 %s4693_s18, 4  ;;  %s4566_s21 = int_to_ptr.vmem [resolvable:$false] %s4565_s21 }
  0x67   : > { %s4567_s17 = scalar_lea.vmem %s4566_s21, 256  ;;  %p4568_p8 = scmp.lt.s32.totalorder %s4910_s6, %s4566_s21 }
  0x68   : > { %p4563_p9 = pnand %p4561_p1, %p4549_p10  ;;  %p4569_p2 = scmp.lt.s32.totalorder %s4567_s17, %s4560_s22 }
  0x6a   : > { %p4564_p11 = pneg %p4563_p9  ;;  %p4570_p6 = por %p4569_p2, %p4568_p8 }
  0x6c   : > { %p4571_p13 = pnand %p4570_p6, %p4564_p11 }
  0x6e   : > { %4574 = shalt.err (!%p4571_p13)
}
  0x6f   : > { %4328 = dma.hbm_to_vmem [thread:$0]  (!%p4914_p7), %s4907_s4, 128, %s4910_s6, %s460_s26  }
  0x70   : > { %s481_s13 = scalar_lea.vmem [#allocation8], %s4901_s25  ;;  %s478_s14 = scalar_lea.sflag [#allocation9], %s477_s24 }
  0x71   : > { %s488_s29 = sshll.u32 %s481_s13, 4  ;;  %s4575_s23 = scalar_lea.hbm %s4921_s3, 128  ;;  %s489_s29 = int_to_ptr.vmem [resolvable:$true] %s488_s29 }
  0x72   : > { %p4576_p1 = scmp.ne.s32.totalorder %s4921_s3, %s4575_s23  ;;  %s4580_s18 = scalar_lea.hbm %s5512_s1, 256 }
  0x73   : > { %p4581_p2 = scmp.lt.s32.totalorder %s4921_s3, %s5512_s1  ;;  %p4582_p8 = scmp.lt.s32.totalorder %s4580_s18, %s4575_s23 }
  0x74   : > { %p4578_p4 = pnand %p4576_p1, %p4549_p10 }
  0x75   : > { %p4583_p12 = por %p4582_p8, %p4581_p2 }
  0x76   : > { %p4579_p6 = pneg %p4578_p4 }
  0x78   : > { %p4584_p0 = pnand %p4583_p12, %p4579_p6 }
  0x7a   : > { %4587 = shalt.err (!%p4584_p0)
}
  0x7b   : > { %s4588_s4 = scalar_lea.vmem %s489_s29, 128  ;;  %s4694_s6 = smov [#allocation8]  }
  0x7c   : > { %p4589_p5 = scmp.ne.s32.totalorder %s489_s29, %s4588_s4  ;;  %s4593_s26 = sshll.u32 %s4694_s6, 4  ;;  %s4594_s26 = int_to_ptr.vmem [resolvable:$false] %s4593_s26 }
  0x7d   : > { %s4595_s25 = scalar_lea.vmem %s4594_s26, 256  ;;  %p4596_p13 = scmp.lt.s32.totalorder %s489_s29, %s4594_s26 }
  0x7e   : > { %p4591_p9 = pnand %p4589_p5, %p4549_p10  ;;  %p4597_p1 = scmp.lt.s32.totalorder %s4595_s25, %s4588_s4 }
  0x80   : > { %p4592_p11 = pneg %p4591_p9  ;;  %p4598_p4 = por %p4597_p1, %p4596_p13 }
  0x82   : > { %p4599_p3 = pnand %p4598_p4, %p4592_p11 }
  0x84   : > { %4602 = shalt.err (!%p4599_p3)
}
  0x85   : > { %4331 = dma.hbm_to_vmem [thread:$0]  (!%p4914_p7), %s4921_s3, 128, %s489_s29, %s478_s14  }
  0x86   : > { %p5560_p6 = scmp.ne.s32.totalorder %s5545_s20, 0 }
  0x87   : > { %s4972_s24 = sand.u32 (!%p5560_p6), 1, %s4675_s30   ;;  %p5561_p10 = scmp.ne.s32.totalorder (!%p5560_p6), %s5555_s28, 0 }
  0x88   : > { %497 = sbr.rel (%p5560_p6) target bundleno = 5086 (0x13de), region = 76  ;;  %s4975_s13 = sshll.u32 (!%p5560_p6), %s4972_s24, 3 }
  0x89   : > { %s500_s23 = scalar_lea.sflag (!%p5560_p6), [#allocation6], %s4972_s24  ;;  %s503_s15 = scalar_lea.vmem (!%p5560_p6), [#allocation5], %s4975_s13 }
  0x8d   : > { %4646 = dma.done.wait (%p5561_p10), %s500_s23, 128  }
  0x8e   : > { %4648 = vsyncadd (%p5561_p10), %s500_s23, 4294967168  ;;  %s508_s7 = sand.u32 1, %s4797_s19   ;;  %s512_s3 = scalar_lea.vmem [#allocation8], %s4975_s13 }
  0x8f   : > { %s509_s20 = scalar_lea.sflag [#allocation9], %s508_s7 }
  0x90   : > { %4650 = dma.done.wait (%p5561_p10), %s509_s20, 128  }
  0x91   : > { %4652 = vsyncadd (%p5561_p10), %s509_s20, 4294967168  ;;  %p5562_p3 = scmp.eq.s32.totalorder %s4797_s19, 0 }
  0x93   : > { %4654 = dma.done.wait (%p5562_p3), [#allocation9], 96   ;;  %p5563_p7 = pmov %p5562_p3 }
  0x94   : > { %p5564_p2 = pmov %p5562_p3 }
  0x95   : > { %4656 = vsyncadd (%p5563_p7), [#allocation9], 4294967200 }
  0x96   : > { %4658 = dma.done.wait (%p5564_p2), [#allocation12], 2048   ;;  %p5565_p8 = pmov %p5564_p2 }
  0x97   : > { %p5566_p12 = pmov %p5564_p2 }
  0x98   : > { %4660 = vsyncadd (%p5565_p8), [#allocation12], 4294965248 }
  0x99   : > { %4662 = dma.done.wait (%p5566_p12), [#allocation15], 32   ;;  %p5567_p0 = pmov %p5564_p2 }
  0x9a   : > { %vm583_vm0 = vcmask 261120   ;;  %v5001_v0 = vld [vmem:[%s503_s15] sm:$0xff]  ;;  %v623_v7 = vld [vmem:[%s5513_s2 + $0x18] sm:$0xff]  ;;  %v4695_v9 = vmov 0.0   ;;  %v622_v10 = vld [vmem:[%s5513_s2 + $0x10] sm:$0xff]  ;;  %vm4696_vm1 = vmmov 0  }
  0x9b   : > { %4664 = vsyncadd (%p5567_p0), [#allocation15], 4294967264  ;;  %v584_v1 = vsel %vm583_vm0, %v5001_v0, 0.0  ;;  %v3841_v8 = vld [vmem:[%s5513_s2 + $0x38] sm:$0xff]  ;;  %4044 = vmatprep.subr.mxu0 %v4695_v9  ;;  %4055 = vmatprep.subr.mxu1 %v4695_v9  ;;  %v3840_v11 = vld [vmem:[%s5513_s2 + $0x30] sm:$0xff]  ;;  %vm870_vm4 = vcmask 64512  }
  0x9c   : > { %585 = vadd.xlane.f32.xlu0 %v584_v1  ;;  %4045 = vmatpush3.msra.mxu0 %v623_v7  ;;  %v621_v12 = vld [vmem:[%s5513_s2 + $0x8] sm:$0xff]  ;;  %v620_v14 = vld [vmem:[%s5513_s2] sm:$0xff]  ;;  %v3847_v30 = vld [vmem:[%s5513_s2 + $0x58] sm:$0xff]  ;;  %s4697_s7 = smov 120   ;;  %s4698_s20 = smov 112   ;;  %vm2027_vm8 = vcmask 523264  }
  0x9d   : > { %4056 = vmatpush3.msra.mxu1 %v3841_v8  ;;  %4046 = vmatprep.subr.mxu0 %v4695_v9  ;;  %v3839_v13 = vld [vmem:[%s5513_s2 + $0x28] sm:$0xff]  ;;  %v3838_v15 = vld [vmem:[%s5513_s2 + $0x20] sm:$0xff]  ;;  %v3846_v31 = vld [vmem:[%s5513_s2 + $0x50] sm:$0xff]  ;;  %s4699_s28 = smov 104   ;;  %s5568_s26 = sld [smem:[#allocation32_spill]] }
  0x9e   : > { %4057 = vmatprep.subr.mxu1 %v4695_v9  ;;  %4047 = vmatpush3.msra.mxu0 %v622_v10  ;;  %v3834_v24 = vld [vmem:[%s5521_s10] ss:$0 sm:$0xff]  ;;  %v3845_v32 = vld [vmem:[%s5513_s2 + $0x48] sm:$0xff]  ;;  %v3842_v35 = vld [vmem:[#allocation10 + $0x1] ss:$0 sm:$0xff]  ;;  %s3935_s25 = sshll.u32 %s4797_s19, 7 }
  0x9f   : > { %4058 = vmatpush3.msra.mxu1 %v3840_v11  ;;  %4048 = vmatprep.subr.mxu0 %v4695_v9  ;;  %v3835_v27 = vld [vmem:[%s5522_s11] ss:$0 sm:$0xff]  ;;  %v3848_v42 = vld [vmem:[#allocation10 + $0x2] ss:$0 sm:$0xff]  ;;  %v5117_v61 = vld [vmem:[%s512_s3] sm:$0xff]  ;;  %s577_s23 = scalar_lea.vmem [#allocation16], %s4975_s13 }
  0xa0   : > { %4059 = vmatprep.subr.mxu1 %v4695_v9  ;;  %4049 = vmatpush3.msra.mxu0 %v621_v12  ;;  %v3844_v33 = vld [vmem:[%s5513_s2 + $0x40] sm:$0xff]  ;;  %vm580_vm5 = vcmp.lt.f32.partialorder %v5117_v61, 0.5  ;;  %s3684_s15 = sshll.u32 %s577_s23, 4  ;;  %s3671_s29 = scalar_lea.sflag [#allocation7], %s4972_s24  ;;  %s3685_s15 = int_to_ptr.vmem [resolvable:$true] %s3684_s15 }
  0xa1   : > { %4060 = vmatpush3.msra.mxu1 %v3839_v13  ;;  %4050 = vmatprep.subr.mxu0 %v4695_v9  ;;  %v3836_v34 = vld [vmem:[#allocation10] ss:$0 sm:$0xff]  ;;  %s4603_s14 = scalar_lea.vmem %s3685_s15, 128  ;;  %p5570_p9 = scmp.ne.s32.totalorder %s5556_s27, 0 }
  0xa2   : > { %4061 = vmatprep.subr.mxu1 %v4695_v9  ;;  %4051 = vmatpush3.msra.mxu0 %v620_v14  ;;  %p4604_p5 = scmp.ne.s32.totalorder %s3685_s15, %s4603_s14  ;;  %s4700_s22 = smov [#allocation16]  }
  0xa3   : > { %4052 = vmatprep.mubr.msk.f32.mxu0 %vm4696_vm1, %v4695_v9  ;;  %4062 = vmatpush3.msra.mxu1 %v3838_v15  ;;  %s4607_s18 = sshll.u32 %s4700_s22, 4  ;;  %s4608_s18 = int_to_ptr.vmem [resolvable:$false] %s4607_s18 }
  0xa4   : > { %4063 = vmatprep.mubr.msk.f32.mxu1 %vm4696_vm1, %v4695_v9  ;;  %4066 = vmatprep.subr.mxu0 %v4695_v9  ;;  %p4605_p11 = pnand %p4604_p5, %p5570_p9  ;;  %s4609_s19 = scalar_lea.vmem %s4608_s18, 256 }
  0xa5   : > { %4082 = vmatprep.subr.mxu1 %v4695_v9  ;;  %p4610_p1 = scmp.lt.s32.totalorder %s3685_s15, %s4608_s18  ;;  %p4611_p4 = scmp.lt.s32.totalorder %s4609_s19, %s4603_s14 }
  0xa6   : > { %p4606_p13 = pneg %p4605_p11 }
  0xa7   : > { %p4612_p6 = por %p4611_p4, %p4610_p1 }
  0xa9   : > { %p4613_p10 = pnand %p4612_p6, %p4606_p13 }
 0x125   : > { %v586_v2 = vpop.xlane.xlu0 %585 }
 0x126   : > { %v588_v3 = vmul.f32 0.03125, %v586_v2 }
 0x128   : > { %v589_v4 = vsub.f32 %v5001_v0, %v588_v3 }
 0x12a   : > { %v590_v5 = vmul.f32 %v589_v4, %v589_v4  ;;  %v609_v25 = vmul.f32 %v3834_v24, %v589_v4 }
 0x12c   : > { %v591_v6 = vsel %vm583_vm0, %v590_v5, 0.0 }
 0x12d   : > { %592 = vadd.xlane.f32.xlu0 %v591_v6 }
 0x1b6   : > { %v593_v16 = vpop.xlane.xlu0 %592 }
 0x1b7   : > { %v595_v17 = vmul.f32 0.032258064, %v593_v16 }
 0x1b9   : > { %4391 = vrsqrt.f32 %v595_v17  ;;  %vm598_vm2 = vcmp.eq.f32.partialorder %v595_v17, inf  ;;  %v601_v20 = vand.u32 2147483648, %v595_v17  ;;  %vm600_vm3 = vcmp.eq.f32.partialorder %v595_v17, 0.0 }
 0x1c6   : > { %v4392_v18 = vpop.eup %4391 }
 0x1c7   : > { %v597_v19 = vmul.f32 %v4392_v18, %v595_v17 }
 0x1c9   : > { %v599_v21 = vsel %vm598_vm2, %v595_v17, %v597_v19 }
 0x1ca   : > { %v602_v22 = vsel %vm600_vm3, %v601_v20, %v599_v21 }
 0x1cb   : > { %v610_v23 = vadd.f32 1e-06, %v602_v22 }
 0x1cd   : > { %4393 = vrcp.f32 %v610_v23 }
 0x1da   : > { %v4394_v26 = vpop.eup %4393 }
 0x1db   : > { %v612_v28 = vmul.f32 %v4394_v26, %v609_v25 }
 0x1dd   : > { %v619_v29 = vadd.f32 %v3835_v27, %v612_v28 }
 0x1df   : > { %4053 = vmatmul.mubr.msk.f32.vlgmr.msra.gmra.mxu0 %vm583_vm0, %v619_v29  ;;  %4064 = vmatmul.mubr.msk.f32.vlgmr.msra.gmra.mxu1 %vm583_vm0, %v619_v29 }
 0x1e0   : > { %4067 = vmatpush3.msra.mxu0 %v3847_v30  ;;  %4074 = vmatprep.mubr.msk.f32.mxu0 %vm4696_vm1, %v4695_v9 }
 0x1e1   : > { %4068 = vmatprep.subr.mxu0 %v4695_v9  ;;  %4084 = vmatprep.mubr.msk.f32.mxu1 %vm4696_vm1, %v4695_v9 }
 0x1e2   : > { %4069 = vmatpush3.msra.mxu0 %v3846_v31 }
 0x1e3   : > { %4070 = vmatprep.subr.mxu0 %v4695_v9 }
 0x1e4   : > { %4071 = vmatpush3.msra.mxu0 %v3845_v32 }
 0x1e5   : > { %4072 = vmatprep.subr.mxu0 %v4695_v9 }
 0x1e6   : > { %4073 = vmatpush3.msra.mxu0 %v3844_v33 }
 0x1e7   : > { %4075 = vmatmul.mubr.msk.f32.vlgmr.msra.gmra.mxu0 %vm583_vm0, %v619_v29  ;;  %4077 = vmatprep.subr.mxu0 %v4695_v9 }
 0x1e8   : > { %4079 = vmatprep.mubr.msk.f32.mxu0 %vm4696_vm1, %v4695_v9 }
 0x29f   : > { %v700_v36 = vpop.f32.mrf.mxu0  ;;  %v783_v37 = vpop.f32.mrf.mxu1 }
 0x2a0   : > { %v701_v38 = vadd.f32 %v3836_v34, %v700_v36  ;;  %v784_v39 = vadd.f32 %v3842_v35, %v783_v37 }
 0x2a1   : > { %v4054_v40 = vpop.f32.mrf.mxu0  ;;  %v4065_v41 = vpop.f32.mrf.mxu1 }
 0x2a2   : > { %871 = vst.msk [vmem:[#allocation2] sm:$0xff] %vm870_vm4, %v701_v38  ;;  %872 = vst.msk [vmem:[#allocation3] sm:$0xff] %vm870_vm4, %v784_v39  ;;  %881 = vrot.lane.b32.xlu1 %v784_v39, %s4697_s7  ;;  %875 = vrot.lane.b32.xlu0 %v701_v38, %s4697_s7 }
 0x2a6   : > { %897 = vrot.lane.b32.xlu1 %v784_v39, %s4698_s20 }
 0x2a7   : > { %v866_v43 = vpop.f32.mrf.mxu0 }
 0x2a8   : > { %v5081_v44 = vadd.f32 %v3848_v42, %v866_v43 }
 0x2a9   : > { %v4076_v45 = vpop.f32.mrf.mxu0  ;;  %v926_v46 = vld [vmem:[#allocation3] sm:$0xff] }
 0x2aa   : > { %873 = vst.msk [vmem:[#allocation4] sm:$0xff] %vm870_vm4, %v5081_v44  ;;  %912 = vrot.lane.b32.xlu1 %v784_v39, %s4699_s28  ;;  %4078 = vmatpush3.xpose.msk.msra.mxu0 %vm870_vm4, %v926_v46  ;;  %v922_v47 = vld [vmem:[#allocation2] sm:$0xff] }
 0x2ab   : > { %4087 = vmatprep.subr.mxu0 %v4695_v9 }
 0x2ad   : > { %4080 = vmatmul.mubr.msk.f32.vlgmr.msra.gmra.mxu0 %vm870_vm4, %v922_v47 }
 0x2ae   : > { %892 = vrot.lane.b32.xlu1 %v701_v38, %s4698_s20  ;;  %4089 = vmatprep.mubr.msk.f32.mxu0 %vm4696_vm1, %v4695_v9 }
 0x2b1   : > { %v930_v59 = vld [vmem:[#allocation4] sm:$0xff] }
 0x2b2   : > { %907 = vrot.lane.b32.xlu1 %v701_v38, %s4699_s28 }
 0x314   : > { %v882_v48 = vpop.permute.xlu1 %881  ;;  %v876_v49 = vpop.permute.xlu0 %875 }
 0x315   : > { %885 = vst.msk [vmem:[#allocation3 + $0x8] sm:$0xff] %vm870_vm4, %v882_v48  ;;  %879 = vst.msk [vmem:[#allocation2 + $0x8] sm:$0xff] %vm870_vm4, %v876_v49 }
 0x318   : > { %v898_v50 = vpop.permute.xlu1 %897 }
 0x319   : > { %901 = vst.msk [vmem:[#allocation3 + $0x10] sm:$0xff] %vm870_vm4, %v898_v50 }
 0x31c   : > { %v913_v51 = vpop.permute.xlu1 %912  ;;  %v927_v52 = vld [vmem:[#allocation3 + $0x8] sm:$0xff] }
 0x31d   : > { %916 = vst.msk [vmem:[#allocation3 + $0x18] sm:$0xff] %vm870_vm4, %v913_v51  ;;  %4083 = vmatpush3.xpose.msk.msra.mxu1 %vm870_vm4, %v927_v52  ;;  %v923_v53 = vld [vmem:[#allocation2 + $0x8] sm:$0xff] }
 0x31e   : > { %4092 = vmatprep.subr.mxu1 %v4695_v9 }
 0x320   : > { %v893_v54 = vpop.permute.xlu1 %892  ;;  %4085 = vmatmul.mubr.msk.f32.vlgmr.msra.gmra.mxu1 %vm870_vm4, %v923_v53  ;;  %v928_v55 = vld [vmem:[#allocation3 + $0x10] sm:$0xff]  ;;  %v1584_v53 = vld [vmem:[#allocation11] sm:$0xff] }
 0x321   : > { %896 = vst.msk [vmem:[#allocation2 + $0x10] sm:$0xff] %vm870_vm4, %v893_v54  ;;  %4088 = vmatpush3.xpose.msk.msra.mxu0 %vm870_vm4, %v928_v55  ;;  %4094 = vmatprep.mubr.msk.f32.mxu1 %vm4696_vm1, %v4695_v9 }
 0x322   : > { %4097 = vmatprep.subr.mxu0 %v4695_v9 }
 0x324   : > { %v908_v56 = vpop.permute.xlu1 %907  ;;  %v929_v57 = vld [vmem:[#allocation3 + $0x18] sm:$0xff] }
 0x325   : > { %911 = vst.msk [vmem:[#allocation2 + $0x18] sm:$0xff] %vm870_vm4, %v908_v56  ;;  %4093 = vmatpush3.xpose.msk.msra.mxu1 %vm870_vm4, %v929_v57 }
 0x326   : > { %4102 = vmatprep.subr.mxu1 %v4695_v9 }
 0x328   : > { %v924_v58 = vld [vmem:[#allocation2 + $0x10] sm:$0xff] }
 0x329   : > { %4090 = vmatmul.mubr.msk.f32.vlgmr.msra.gmra.mxu0 %vm870_vm4, %v924_v58 }
 0x32a   : > { %4098 = vmatpush3.msra.mxu0 %v930_v59  ;;  %4099 = vmatprep.mubr.msk.f32.mxu0 %vm4696_vm1, %v4695_v9  ;;  %v1585_v59 = vld [vmem:[#allocation11 + $0x8] sm:$0xff] }
 0x32b   : > { %4107 = vmatprep.subr.mxu0 %v4695_v9 }
 0x32c   : > { %v925_v60 = vld [vmem:[#allocation2 + $0x18] sm:$0xff] }
 0x32d   : > { %4095 = vmatmul.mubr.msk.f32.vlgmr.msra.gmra.mxu1 %vm870_vm4, %v925_v60  ;;  %v1586_v60 = vld [vmem:[#allocation11 + $0x10] sm:$0xff] }
 0x32e   : > { %4104 = vmatprep.mubr.msk.f32.mxu1 %vm4696_vm1, %v4695_v9 }
 0x36d   : > { %v1006_v62 = vpop.f32.mrf.mxu0 }
 0x36e   : > { %v1238_v63 = vmul.f32 0.35355338, %v1006_v62 }
 0x36f   : > { %v4081_v1 = vpop.f32.mrf.mxu0 }
 0x370   : > { %v1244_v2 = vsel %vm580_vm5, -1e+09, %v1238_v63  ;;  %v1587_v1 = vld [vmem:[#allocation11 + $0x18] sm:$0xff] }
 0x371   : > { %v1248_v3 = vsel %vm870_vm4, %v1244_v2, -inf }
 0x372   : > { %1249 = vmax.xlane.f32.xlu1 %v1248_v3 }
 0x3e0   : > { %v1082_v4 = vpop.f32.mrf.mxu1 }
 0x3e1   : > { %v1239_v5 = vmul.f32 0.35355338, %v1082_v4 }
 0x3e2   : > { %v4086_v6 = vpop.f32.mrf.mxu1 }
 0x3e3   : > { %v1245_v7 = vsel %vm580_vm5, -1e+09, %v1239_v5 }
 0x3e4   : > { %v1251_v8 = vsel %vm870_vm4, %v1245_v7, -inf }
 0x3e5   : > { %1252 = vmax.xlane.f32.xlu0 %v1251_v8 }
 0x3e9   : > { %v1158_v10 = vpop.f32.mrf.mxu0 }
 0x3ea   : > { %v1240_v11 = vmul.f32 0.35355338, %v1158_v10 }
 0x3eb   : > { %v4091_v12 = vpop.f32.mrf.mxu0 }
 0x3ec   : > { %v1246_v13 = vsel %vm580_vm5, -1e+09, %v1240_v11 }
 0x3ed   : > { %v1234_v14 = vpop.f32.mrf.mxu1  ;;  %v1254_v15 = vsel %vm870_vm4, %v1246_v13, -inf }
 0x3ee   : > { %v1241_v16 = vmul.f32 0.35355338, %v1234_v14  ;;  %1255 = vmax.xlane.f32.xlu1 %v1254_v15 }
 0x3ef   : > { %v4096_v17 = vpop.f32.mrf.mxu1 }
 0x3f0   : > { %v1247_v18 = vsel %vm580_vm5, -1e+09, %v1241_v16 }
 0x3f1   : > { %v1257_v19 = vsel %vm870_vm4, %v1247_v18, -inf }
 0x3f2   : > { %1258 = vmax.xlane.f32.xlu1 %v1257_v19 }
 0x3fb   : > { %v1250_v20 = vpop.xlane.xlu1 %1249 }
 0x3fc   : > { %v1260_v21 = vsub.f32 %v1244_v2, %v1250_v20 }
 0x3fe   : > { %v1264_v22 = vmul.f32 1.442695, %v1260_v21 }
 0x400   : > { %4395 = vpow2.f32 %v1264_v22 }
 0x40d   : > { %v4396_v23 = vpop.eup %4395 }
 0x40e   : > { %v1272_v24 = vsel %vm870_vm4, %v4396_v23, 0.0 }
 0x40f   : > { %1273 = vadd.xlane.f32.xlu0 %v1272_v24  ;;  %v3866_v24 = vld [vmem:[%s5516_s5] ss:$0 sm:$0xff] }
 0x46e   : > { %v1253_v25 = vpop.xlane.xlu0 %1252 }
 0x46f   : > { %v1261_v26 = vsub.f32 %v1245_v7, %v1253_v25 }
 0x471   : > { %v1266_v27 = vmul.f32 1.442695, %v1261_v26 }
 0x473   : > { %4397 = vpow2.f32 %v1266_v27 }
 0x477   : > { %v1256_v28 = vpop.xlane.xlu1 %1255 }
 0x478   : > { %v1262_v29 = vsub.f32 %v1246_v13, %v1256_v28 }
 0x47a   : > { %v1268_v30 = vmul.f32 1.442695, %v1262_v29 }
 0x47b   : > { %v1259_v36 = vpop.xlane.xlu1 %1258 }
 0x47c   : > { %4399 = vpow2.f32 %v1268_v30  ;;  %v1263_v37 = vsub.f32 %v1247_v18, %v1259_v36  ;;  %v2026_v36 = vld [vmem:[%s5519_s8 + $0x38] sm:$0xff] }
 0x47e   : > { %v1270_v38 = vmul.f32 1.442695, %v1263_v37  ;;  %v2025_v37 = vld [vmem:[%s5519_s8 + $0x30] sm:$0xff] }
 0x480   : > { %v4398_v31 = vpop.eup %4397 }
 0x481   : > { %v1275_v32 = vsel %vm870_vm4, %v4398_v31, 0.0 }
 0x482   : > { %1276 = vadd.xlane.f32.xlu1 %v1275_v32 }
 0x489   : > { %v4400_v33 = vpop.eup %4399 }
 0x48a   : > { %v1278_v34 = vsel %vm870_vm4, %v4400_v33, 0.0 }
 0x48b   : > { %1279 = vadd.xlane.f32.xlu0 %v1278_v34  ;;  %v1936_v34 = vld [vmem:[#allocation13 + $0x10] sm:$0xff] }
 0x493   : > { %902 = vrot.lane.b32.xlu1 %v5081_v44, %s4698_s20 }
 0x498   : > { %v1274_v35 = vpop.xlane.xlu0 %1273 }
 0x499   : > { %4401 = vrcp.f32 %v1274_v35  ;;  %v1934_v35 = vld [vmem:[#allocation13] sm:$0xff] }
 0x49a   : > { %4403 = vpow2.f32 %v1270_v38  ;;  %v2024_v38 = vld [vmem:[%s5519_s8 + $0x28] sm:$0xff] }
 0x4a1   : > { %887 = vrot.lane.b32.xlu0 %v5081_v44, %s4697_s7 }
 0x4a6   : > { %v4402_v39 = vpop.eup %4401 }
 0x4a7   : > { %v1288_v40 = vmul.f32 %v4402_v39, %v4396_v23  ;;  %v4404_v41 = vpop.eup %4403  ;;  %v2023_v39 = vld [vmem:[%s5519_s8 + $0x20] sm:$0xff] }
 0x4a8   : > { %v1281_v42 = vsel %vm870_vm4, %v4404_v41, 0.0 }
 0x4a9   : > { %4100 = vmatmul.mubr.msk.f32.vlgmr.msra.gmra.mxu0 %vm870_vm4, %v1288_v40  ;;  %v2022_v40 = vld [vmem:[%s5519_s8 + $0x18] sm:$0xff] }
 0x4aa   : > { %4109 = vmatprep.mubr.msk.f32.mxu0 %vm4696_vm1, %v4695_v9 }
 0x4b7   : > { %1282 = vadd.xlane.f32.xlu1 %v1281_v42 }
 0x4c8   : > { %917 = vrot.lane.b32.xlu1 %v5081_v44, %s4699_s28 }
 0x50b   : > { %v1277_v43 = vpop.xlane.xlu1 %1276 }
 0x50c   : > { %4405 = vrcp.f32 %v1277_v43 }
 0x50f   : > { %v903_v45 = vpop.permute.xlu1 %902 }
 0x510   : > { %906 = vst.msk [vmem:[#allocation4 + $0x10] sm:$0xff] %vm870_vm4, %v903_v45 }
 0x514   : > { %v1280_v46 = vpop.xlane.xlu0 %1279 }
 0x515   : > { %4407 = vrcp.f32 %v1280_v46 }
 0x517   : > { %v932_v47 = vld [vmem:[#allocation4 + $0x10] sm:$0xff] }
 0x518   : > { %v888_v48 = vpop.permute.xlu0 %887  ;;  %4108 = vmatpush3.msra.mxu0 %v932_v47 }
 0x519   : > { %891 = vst.msk [vmem:[#allocation4 + $0x8] sm:$0xff] %vm870_vm4, %v888_v48  ;;  %4117 = vmatprep.subr.mxu0 %v4695_v9  ;;  %v4406_v49 = vpop.eup %4405 }
 0x51a   : > { %v1289_v51 = vmul.f32 %v4406_v49, %v4398_v31 }
 0x520   : > { %v931_v50 = vld [vmem:[#allocation4 + $0x8] sm:$0xff] }
 0x521   : > { %4103 = vmatpush3.msra.mxu1 %v931_v50  ;;  %v3869_v50 = vld [vmem:[%s5521_s10 + $0x1] ss:$0 sm:$0xff] }
 0x522   : > { %v4408_v52 = vpop.eup %4407  ;;  %4105 = vmatmul.mubr.msk.f32.vlgmr.msra.gmra.mxu1 %vm870_vm4, %v1289_v51  ;;  %4112 = vmatprep.subr.mxu1 %v4695_v9 }
 0x523   : > { %v1290_v44 = vmul.f32 %v4408_v52, %v4400_v33  ;;  %4114 = vmatprep.mubr.msk.f32.mxu1 %vm4696_vm1, %v4695_v9  ;;  %v1937_v33 = vld [vmem:[#allocation13 + $0x18] sm:$0xff] }
 0x525   : > { %4110 = vmatmul.mubr.msk.f32.vlgmr.msra.gmra.mxu0 %vm870_vm4, %v1290_v44  ;;  %v3870_v44 = vld [vmem:[%s5522_s11 + $0x1] ss:$0 sm:$0xff] }
 0x526   : > { %4118 = vmatpush3.msra.mxu0 %v1584_v53  ;;  %4119 = vmatprep.mubr.msk.f32.mxu0 %vm4696_vm1, %v4695_v9 }
 0x527   : > { %4127 = vmatprep.subr.mxu0 %v4695_v9 }
 0x540   : > { %v1283_v54 = vpop.xlane.xlu1 %1282 }
 0x541   : > { %4409 = vrcp.f32 %v1283_v54 }
 0x544   : > { %v918_v55 = vpop.permute.xlu1 %917 }
 0x545   : > { %921 = vst.msk [vmem:[#allocation4 + $0x18] sm:$0xff] %vm870_vm4, %v918_v55  ;;  %v2021_v55 = vld [vmem:[%s5519_s8 + $0x10] sm:$0xff] }
 0x54c   : > { %v933_v56 = vld [vmem:[#allocation4 + $0x18] sm:$0xff] }
 0x54d   : > { %4113 = vmatpush3.msra.mxu1 %v933_v56  ;;  %v2020_v56 = vld [vmem:[%s5519_s8 + $0x8] sm:$0xff] }
 0x54e   : > { %v4410_v57 = vpop.eup %4409  ;;  %4122 = vmatprep.subr.mxu1 %v4695_v9 }
 0x54f   : > { %v1291_v58 = vmul.f32 %v4410_v57, %v4404_v41  ;;  %v2019_v57 = vld [vmem:[%s5519_s8] sm:$0xff] }
 0x551   : > { %4115 = vmatmul.mubr.msk.f32.vlgmr.msra.gmra.mxu1 %vm870_vm4, %v1291_v58  ;;  %v3871_v58 = vld [vmem:[#allocation14] ss:$0 sm:$0xff] }
 0x552   : > { %4124 = vmatprep.mubr.msk.f32.mxu1 %vm4696_vm1, %v4695_v9  ;;  %4123 = vmatpush3.msra.mxu1 %v1585_v59 }
 0x553   : > { %4132 = vmatprep.subr.mxu1 %v4695_v9 }
 0x569   : > { %v1361_v62 = vpop.f32.mrf.mxu0 }
 0x56a   : > { %4120 = vmatmul.mubr.msk.f32.vlgmr.msra.gmra.mxu0 %vm870_vm4, %v1361_v62 }
 0x56b   : > { %v4101_v63 = vpop.f32.mrf.mxu0  ;;  %4128 = vmatpush3.msra.mxu0 %v1586_v60  ;;  %4129 = vmatprep.mubr.msk.f32.mxu0 %vm4696_vm1, %v4695_v9 }
 0x56c   : > { %4137 = vmatprep.subr.mxu0 %v4695_v9 }
 0x5e2   : > { %v1434_v2 = vpop.f32.mrf.mxu1 }
 0x5e3   : > { %4125 = vmatmul.mubr.msk.f32.vlgmr.msra.gmra.mxu1 %vm870_vm4, %v1434_v2  ;;  %v3874_v2 = vld [vmem:[%s5520_s9] ss:$0 sm:$0xff] }
 0x5e4   : > { %v4106_v3 = vpop.f32.mrf.mxu1  ;;  %4133 = vmatpush3.msra.mxu1 %v1587_v1  ;;  %4134 = vmatprep.mubr.msk.f32.mxu1 %vm4696_vm1, %v4695_v9 }
 0x5e5   : > { %v1507_v4 = vpop.f32.mrf.mxu0  ;;  %4148 = vmatprep.subr.mxu1 %v4695_v9 }
 0x5e6   : > { %4130 = vmatmul.mubr.msk.f32.vlgmr.msra.gmra.mxu0 %vm870_vm4, %v1507_v4 }
 0x5e7   : > { %v4111_v5 = vpop.f32.mrf.mxu0  ;;  %4145 = vmatprep.mubr.msk.f32.mxu0 %vm4696_vm1, %v4695_v9  ;;  %4138 = vmatpush3.msra.mxu0 %v1937_v33 }
 0x5e8   : > { %4139 = vmatprep.subr.mxu0 %v4695_v9 }
 0x5e9   : > { %4140 = vmatpush3.msra.mxu0 %v1936_v34 }
 0x5ea   : > { %4141 = vmatprep.subr.mxu0 %v4695_v9 }
 0x611   : > { %v1580_v6 = vpop.f32.mrf.mxu1 }
 0x612   : > { %4135 = vmatmul.mubr.msk.f32.vlgmr.msra.gmra.mxu1 %vm870_vm4, %v1580_v6 }
 0x613   : > { %v4116_v7 = vpop.f32.mrf.mxu1  ;;  %4164 = vmatprep.mubr.msk.f32.mxu1 %vm4696_vm1, %v4695_v9  ;;  %4149 = vmatpush3.msra.mxu1 %v2026_v36  ;;  %v3886_v36 = vld [vmem:[%s5513_s2 + $0x88] sm:$0xff] }
 0x614   : > { %4150 = vmatprep.subr.mxu1 %v4695_v9 }
 0x615   : > { %4151 = vmatpush3.msra.mxu1 %v2025_v37  ;;  %v3885_v37 = vld [vmem:[%s5513_s2 + $0x80] sm:$0xff] }
 0x616   : > { %4152 = vmatprep.subr.mxu1 %v4695_v9 }
 0x617   : > { %4153 = vmatpush3.msra.mxu1 %v2024_v38  ;;  %v3883_v38 = vld [vmem:[#allocation10 + $0x3] ss:$0 sm:$0xff] }
 0x618   : > { %4154 = vmatprep.subr.mxu1 %v4695_v9 }
 0x619   : > { %4155 = vmatpush3.msra.mxu1 %v2023_v39  ;;  %v3895_v39 = vld [vmem:[#allocation10 + $0x5] ss:$0 sm:$0xff] }
 0x61a   : > { %4156 = vmatprep.subr.mxu1 %v4695_v9 }
 0x61b   : > { %4157 = vmatpush3.msra.mxu1 %v2022_v40 }
 0x61c   : > { %4158 = vmatprep.subr.mxu1 %v4695_v9 }
 0x61d   : > { %4159 = vmatpush3.msra.mxu1 %v2021_v55 }
 0x61e   : > { %4160 = vmatprep.subr.mxu1 %v4695_v9 }
 0x61f   : > { %4161 = vmatpush3.msra.mxu1 %v2020_v56 }
 0x620   : > { %4162 = vmatprep.subr.mxu1 %v4695_v9 }
 0x621   : > { %4163 = vmatpush3.msra.mxu1 %v2019_v57 }
 0x622   : > { %4189 = vmatprep.subr.mxu1 %v4695_v9 }
 0x62a   : > { %v1657_v8 = vpop.f32.mrf.mxu0 }
 0x62b   : > { %v1880_v16 = vsel %vm583_vm0, %v1657_v8, 0.0 }
 0x62c   : > { %v4121_v10 = vpop.f32.mrf.mxu0 }
 0x6a3   : > { %v1730_v11 = vpop.f32.mrf.mxu1 }
 0x6a4   : > { %v1881_v15 = vsel %vm583_vm0, %v1730_v11, 0.0 }
 0x6a5   : > { %v4126_v12 = vpop.f32.mrf.mxu1  ;;  %v1882_v17 = vadd.f32 %v1881_v15, %v1880_v16  ;;  %v3881_v15 = vld [vmem:[%s5513_s2 + $0x70] sm:$0xff] }
 0x6a6   : > { %v1803_v13 = vpop.f32.mrf.mxu0  ;;  %v3893_v16 = vld [vmem:[%s5513_s2 + $0xb0] sm:$0xff] }
 0x6a7   : > { %v1883_v18 = vsel %vm583_vm0, %v1803_v13, 0.0  ;;  %v3882_v13 = vld [vmem:[%s5513_s2 + $0x78] sm:$0xff] }
 0x6a8   : > { %v4131_v14 = vpop.f32.mrf.mxu0  ;;  %v1884_v19 = vadd.f32 %v1883_v18, %v1882_v17  ;;  %v3880_v17 = vld [vmem:[%s5513_s2 + $0x68] sm:$0xff] }
 0x6a9   : > { %v3894_v14 = vld [vmem:[%s5513_s2 + $0xb8] sm:$0xff]  ;;  %v3892_v18 = vld [vmem:[%s5513_s2 + $0xa8] sm:$0xff] }
 0x6d2   : > { %v1876_v20 = vpop.f32.mrf.mxu1 }
 0x6d3   : > { %v1885_v21 = vsel %vm583_vm0, %v1876_v20, 0.0  ;;  %v3891_v20 = vld [vmem:[%s5513_s2 + $0xa0] sm:$0xff] }
 0x6d4   : > { %v1886_v22 = vadd.f32 %v1885_v21, %v1884_v19  ;;  %v4136_v23 = vpop.f32.mrf.mxu1  ;;  %v3879_v19 = vld [vmem:[%s5513_s2 + $0x60] sm:$0xff] }
 0x6d6   : > { %v1887_v25 = vadd.f32 %v1886_v22, %v5001_v0  ;;  %v1935_v0 = vld [vmem:[#allocation13 + $0x8] sm:$0xff] }
 0x6d7   : > { %4142 = vmatpush3.msra.mxu0 %v1935_v0  ;;  %v3888_v0 = vld [vmem:[%s5513_s2 + $0x98] sm:$0xff] }
 0x6d8   : > { %v5184_v26 = vadd.f32 %v3866_v24, %v1887_v25  ;;  %4143 = vmatprep.subr.mxu0 %v4695_v9 }
 0x6d9   : > { %4144 = vmatpush3.msra.mxu0 %v1934_v35  ;;  %v3887_v35 = vld [vmem:[%s5513_s2 + $0x90] sm:$0xff] }
 0x6da   : > { %v1900_v27 = vsel %vm583_vm0, %v5184_v26, 0.0  ;;  %4167 = vmatprep.subr.mxu0 %v4695_v9 }
 0x6db   : > { %1901 = vadd.xlane.f32.xlu0 %v1900_v27 }
 0x764   : > { %v1902_v28 = vpop.xlane.xlu0 %1901 }
 0x765   : > { %v1903_v29 = vmul.f32 0.03125, %v1902_v28 }
 0x767   : > { %v1904_v30 = vsub.f32 %v5184_v26, %v1903_v29  ;;  %v3877_v29 = vld [vmem:[%s5521_s10 + $0x2] ss:$0 sm:$0xff] }
 0x769   : > { %v1905_v31 = vmul.f32 %v1904_v30, %v1904_v30  ;;  %v1923_v51 = vmul.f32 %v3869_v50, %v1904_v30 }
 0x76b   : > { %v1906_v32 = vsel %vm583_vm0, %v1905_v31, 0.0 }
 0x76c   : > { %1907 = vadd.xlane.f32.xlu1 %v1906_v32  ;;  %v3878_v32 = vld [vmem:[%s5522_s11 + $0x2] ss:$0 sm:$0xff] }
 0x7f5   : > { %v1908_v41 = vpop.xlane.xlu1 %1907 }
 0x7f6   : > { %v1909_v42 = vmul.f32 0.032258064, %v1908_v41 }
 0x7f8   : > { %4411 = vrsqrt.f32 %v1909_v42  ;;  %vm1912_vm6 = vcmp.eq.f32.partialorder %v1909_v42, inf  ;;  %v1915_v46 = vand.u32 2147483648, %v1909_v42  ;;  %vm1914_vm7 = vcmp.eq.f32.partialorder %v1909_v42, 0.0 }
 0x805   : > { %v4412_v43 = vpop.eup %4411 }
 0x806   : > { %v1911_v45 = vmul.f32 %v4412_v43, %v1909_v42 }
 0x808   : > { %v1913_v47 = vsel %vm1912_vm6, %v1909_v42, %v1911_v45 }
 0x809   : > { %v1916_v48 = vsel %vm1914_vm7, %v1915_v46, %v1913_v47  ;;  %v3889_v47 = vld [vmem:[#allocation10 + $0x4] ss:$0 sm:$0xff] }
 0x80a   : > { %v1924_v49 = vadd.f32 1e-06, %v1916_v48 }
 0x80c   : > { %4413 = vrcp.f32 %v1924_v49 }
 0x819   : > { %v4414_v52 = vpop.eup %4413 }
 0x81a   : > { %v1926_v53 = vmul.f32 %v4414_v52, %v1923_v51 }
 0x81c   : > { %v1933_v54 = vadd.f32 %v3870_v44, %v1926_v53 }
 0x81e   : > { %4146 = vmatmul.mubr.msk.f32.vlgmr.msra.gmra.mxu0 %vm583_vm0, %v1933_v54 }
 0x81f   : > { %4175 = vmatprep.mubr.msk.f32.mxu0 %vm4696_vm1, %v4695_v9  ;;  %4168 = vmatpush3.msra.mxu0 %v3882_v13 }
 0x820   : > { %4169 = vmatprep.subr.mxu0 %v4695_v9 }
 0x821   : > { %4170 = vmatpush3.msra.mxu0 %v3881_v15 }
 0x822   : > { %4171 = vmatprep.subr.mxu0 %v4695_v9 }
 0x823   : > { %4172 = vmatpush3.msra.mxu0 %v3880_v17 }
 0x824   : > { %4173 = vmatprep.subr.mxu0 %v4695_v9 }
 0x825   : > { %4174 = vmatpush3.msra.mxu0 %v3879_v19 }
 0x826   : > { %4178 = vmatprep.subr.mxu0 %v4695_v9 }
 0x8de   : > { %v2014_v59 = vpop.f32.mrf.mxu0 }
 0x8df   : > { %v2015_v60 = vadd.f32 %v3871_v58, %v2014_v59 }
 0x8e0   : > { %v4147_v62 = vpop.f32.mrf.mxu0 }
 0x8e1   : > { %v2018_v63 = vmax.f32 %v2015_v60, 0.0 }
 0x8e3   : > { %4165 = vmatmul.mubr.msk.f32.vlgmr.msra.gmra.mxu1 %vm2027_vm8, %v2018_v63 }
 0x8e4   : > { %4197 = vmatprep.mubr.msk.f32.mxu1 %vm4696_vm1, %v4695_v9  ;;  %4190 = vmatpush3.msra.mxu1 %v3894_v14 }
 0x8e5   : > { %4191 = vmatprep.subr.mxu1 %v4695_v9 }
 0x8e6   : > { %4192 = vmatpush3.msra.mxu1 %v3893_v16 }
 0x8e7   : > { %4193 = vmatprep.subr.mxu1 %v4695_v9 }
 0x8e8   : > { %4194 = vmatpush3.msra.mxu1 %v3892_v18 }
 0x8e9   : > { %4195 = vmatprep.subr.mxu1 %v4695_v9 }
 0x8ea   : > { %4196 = vmatpush3.msra.mxu1 %v3891_v20 }
 0x8eb   : > { %4205 = vmatprep.subr.mxu1 %v4695_v9 }
 0x9a3   : > { %v2097_v1 = vpop.f32.mrf.mxu1 }
 0x9a4   : > { %v2101_v3 = vadd.f32 %v2097_v1, %v5184_v26 }
 0x9a5   : > { %v4166_v4 = vpop.f32.mrf.mxu1 }
 0x9a6   : > { %v5242_v5 = vadd.f32 %v3874_v2, %v2101_v3 }
 0x9a8   : > { %v2114_v6 = vsel %vm583_vm0, %v5242_v5, 0.0 }
 0x9a9   : > { %2115 = vadd.xlane.f32.xlu0 %v2114_v6 }
 0xa32   : > { %v2116_v7 = vpop.xlane.xlu0 %2115 }
 0xa33   : > { %v2117_v8 = vmul.f32 0.03125, %v2116_v7 }
 0xa35   : > { %v2118_v10 = vsub.f32 %v5242_v5, %v2117_v8 }
 0xa37   : > { %v2119_v11 = vmul.f32 %v2118_v10, %v2118_v10  ;;  %v2137_v30 = vmul.f32 %v3877_v29, %v2118_v10 }
 0xa39   : > { %v2120_v12 = vsel %vm583_vm0, %v2119_v11, 0.0 }
 0xa3a   : > { %2121 = vadd.xlane.f32.xlu0 %v2120_v12 }
 0xac3   : > { %v2122_v21 = vpop.xlane.xlu0 %2121 }
 0xac4   : > { %v2123_v22 = vmul.f32 0.032258064, %v2122_v21 }
 0xac6   : > { %4415 = vrsqrt.f32 %v2123_v22  ;;  %vm2126_vm9 = vcmp.eq.f32.partialorder %v2123_v22, inf  ;;  %v2129_v25 = vand.u32 2147483648, %v2123_v22  ;;  %vm2128_vm10 = vcmp.eq.f32.partialorder %v2123_v22, 0.0 }
 0xad3   : > { %v4416_v23 = vpop.eup %4415 }
 0xad4   : > { %v2125_v24 = vmul.f32 %v4416_v23, %v2123_v22 }
 0xad6   : > { %v2127_v26 = vsel %vm2126_vm9, %v2123_v22, %v2125_v24 }
 0xad7   : > { %v2130_v27 = vsel %vm2128_vm10, %v2129_v25, %v2127_v26 }
 0xad8   : > { %v2138_v28 = vadd.f32 1e-06, %v2130_v27 }
 0xada   : > { %4417 = vrcp.f32 %v2138_v28 }
 0xae7   : > { %v4418_v31 = vpop.eup %4417 }
 0xae8   : > { %v2140_v33 = vmul.f32 %v4418_v31, %v2137_v30 }
 0xaea   : > { %v2147_v34 = vadd.f32 %v3878_v32, %v2140_v33 }
 0xaec   : > { %4176 = vmatmul.mubr.msk.f32.vlgmr.msra.gmra.mxu0 %vm583_vm0, %v2147_v34  ;;  %4198 = vmatmul.mubr.msk.f32.vlgmr.msra.gmra.mxu1 %vm583_vm0, %v2147_v34 }
 0xaed   : > { %4179 = vmatpush3.msra.mxu0 %v3888_v0  ;;  %4186 = vmatprep.mubr.msk.f32.mxu0 %vm4696_vm1, %v4695_v9 }
 0xaee   : > { %4180 = vmatprep.subr.mxu0 %v4695_v9  ;;  %4207 = vmatprep.mubr.msk.f32.mxu1 %vm4696_vm1, %v4695_v9 }
 0xaef   : > { %4181 = vmatpush3.msra.mxu0 %v3887_v35 }
 0xaf0   : > { %4182 = vmatprep.subr.mxu0 %v4695_v9 }
 0xaf1   : > { %4183 = vmatpush3.msra.mxu0 %v3886_v36 }
 0xaf2   : > { %4184 = vmatprep.subr.mxu0 %v4695_v9 }
 0xaf3   : > { %4185 = vmatpush3.msra.mxu0 %v3885_v37 }
 0xaf4   : > { %4187 = vmatmul.mubr.msk.f32.vlgmr.msra.gmra.mxu0 %vm583_vm0, %v2147_v34  ;;  %4200 = vmatprep.subr.mxu0 %v4695_v9 }
 0xaf5   : > { %4202 = vmatprep.mubr.msk.f32.mxu0 %vm4696_vm1, %v4695_v9 }
 0xbac   : > { %v2230_v40 = vpop.f32.mrf.mxu0  ;;  %v2396_v41 = vpop.f32.mrf.mxu1 }
 0xbad   : > { %v2231_v42 = vadd.f32 %v3883_v38, %v2230_v40  ;;  %v5311_v43 = vadd.f32 %v3895_v39, %v2396_v41 }
 0xbae   : > { %v4177_v45 = vpop.f32.mrf.mxu0  ;;  %v4199_v46 = vpop.f32.mrf.mxu1 }
 0xbaf   : > { %2400 = vst.msk [vmem:[#allocation2] sm:$0xff] %vm870_vm4, %v2231_v42  ;;  %2402 = vst.msk [vmem:[#allocation4] sm:$0xff] %vm870_vm4, %v5311_v43  ;;  %2404 = vrot.lane.b32.xlu1 %v2231_v42, %s4697_s7 }
 0xbb4   : > { %v2313_v48 = vpop.f32.mrf.mxu0 }
 0xbb5   : > { %v2314_v49 = vadd.f32 %v3889_v47, %v2313_v48 }
 0xbb6   : > { %v4188_v50 = vpop.f32.mrf.mxu0  ;;  %v2442_v52 = vld [vmem:[#allocation2] sm:$0xff] }
 0xbb7   : > { %2401 = vst.msk [vmem:[#allocation3] sm:$0xff] %vm870_vm4, %v2314_v49  ;;  %2422 = vrot.lane.b32.xlu0 %v2314_v49, %s4698_s20  ;;  %2409 = vrot.lane.b32.xlu1 %v2314_v49, %s4697_s7  ;;  %v2450_v1 = vld [vmem:[#allocation4] sm:$0xff] }
 0xbbb   : > { %2418 = vrot.lane.b32.xlu0 %v2231_v42, %s4698_s20  ;;  %2434 = vrot.lane.b32.xlu1 %v2314_v49, %s4699_s28 }
 0xbbe   : > { %v2446_v51 = vld [vmem:[#allocation3] sm:$0xff] }
 0xbbf   : > { %2430 = vrot.lane.b32.xlu1 %v2231_v42, %s4699_s28  ;;  %4201 = vmatpush3.xpose.msk.msra.mxu0 %vm870_vm4, %v2446_v51 }
 0xbc0   : > { %4210 = vmatprep.subr.mxu0 %v4695_v9 }
 0xbc2   : > { %4203 = vmatmul.mubr.msk.f32.vlgmr.msra.gmra.mxu0 %vm870_vm4, %v2442_v52 }
 0xbc3   : > { %4212 = vmatprep.mubr.msk.f32.mxu0 %vm4696_vm1, %v4695_v9 }
 0xc21   : > { %v2405_v44 = vpop.permute.xlu1 %2404 }
 0xc22   : > { %2407 = vst.msk [vmem:[#allocation2 + $0x8] sm:$0xff] %vm870_vm4, %v2405_v44 }
 0xc29   : > { %v2423_v53 = vpop.permute.xlu0 %2422  ;;  %v2410_v54 = vpop.permute.xlu1 %2409  ;;  %v2443_v60 = vld [vmem:[#allocation2 + $0x8] sm:$0xff] }
 0xc2a   : > { %2425 = vst.msk [vmem:[#allocation3 + $0x10] sm:$0xff] %vm870_vm4, %v2423_v53  ;;  %2412 = vst.msk [vmem:[#allocation3 + $0x8] sm:$0xff] %vm870_vm4, %v2410_v54 }
 0xc2d   : > { %v2419_v55 = vpop.permute.xlu0 %2418  ;;  %v2435_v56 = vpop.permute.xlu1 %2434 }
 0xc2e   : > { %2421 = vst.msk [vmem:[#allocation2 + $0x10] sm:$0xff] %vm870_vm4, %v2419_v55  ;;  %2437 = vst.msk [vmem:[#allocation3 + $0x18] sm:$0xff] %vm870_vm4, %v2435_v56 }
 0xc31   : > { %v2431_v57 = vpop.permute.xlu1 %2430  ;;  %v2447_v58 = vld [vmem:[#allocation3 + $0x8] sm:$0xff]  ;;  %v2448_v59 = vld [vmem:[#allocation3 + $0x10] sm:$0xff] }
 0xc32   : > { %2433 = vst.msk [vmem:[#allocation2 + $0x18] sm:$0xff] %vm870_vm4, %v2431_v57  ;;  %4206 = vmatpush3.xpose.msk.msra.mxu1 %vm870_vm4, %v2447_v58  ;;  %4211 = vmatpush3.xpose.msk.msra.mxu0 %vm870_vm4, %v2448_v59  ;;  %v3103_v59 = vld [vmem:[#allocation11 + $0x20] sm:$0xff] }
 0xc33   : > { %4215 = vmatprep.subr.mxu1 %v4695_v9  ;;  %4220 = vmatprep.subr.mxu0 %v4695_v9 }
 0xc35   : > { %4208 = vmatmul.mubr.msk.f32.vlgmr.msra.gmra.mxu1 %vm870_vm4, %v2443_v60  ;;  %v2444_v62 = vld [vmem:[#allocation2 + $0x10] sm:$0xff]  ;;  %v2449_v63 = vld [vmem:[#allocation3 + $0x18] sm:$0xff] }
 0xc36   : > { %4213 = vmatmul.mubr.msk.f32.vlgmr.msra.gmra.mxu0 %vm870_vm4, %v2444_v62  ;;  %4216 = vmatpush3.xpose.msk.msra.mxu1 %vm870_vm4, %v2449_v63  ;;  %v3104_v63 = vld [vmem:[#allocation11 + $0x28] sm:$0xff] }
 0xc37   : > { %4221 = vmatpush3.msra.mxu0 %v2450_v1  ;;  %4217 = vmatprep.mubr.msk.f32.mxu1 %vm4696_vm1, %v4695_v9  ;;  %v3105_v1 = vld [vmem:[#allocation11 + $0x30] sm:$0xff] }
 0xc38   : > { %4225 = vmatprep.subr.mxu1 %v4695_v9  ;;  %4222 = vmatprep.mubr.msk.f32.mxu0 %vm4696_vm1, %v4695_v9 }
 0xc39   : > { %v2445_v2 = vld [vmem:[#allocation2 + $0x18] sm:$0xff]  ;;  %4230 = vmatprep.subr.mxu0 %v4695_v9 }
 0xc3a   : > { %4218 = vmatmul.mubr.msk.f32.vlgmr.msra.gmra.mxu1 %vm870_vm4, %v2445_v2 }
 0xc3b   : > { %4227 = vmatprep.mubr.msk.f32.mxu1 %vm4696_vm1, %v4695_v9 }
 0xc82   : > { %v2526_v3 = vpop.f32.mrf.mxu0 }
 0xc83   : > { %v2758_v4 = vmul.f32 0.35355338, %v2526_v3 }
 0xc84   : > { %v4204_v6 = vpop.f32.mrf.mxu0 }
 0xc85   : > { %v2762_v7 = vsel %vm580_vm5, -1e+09, %v2758_v4  ;;  %v3106_v4 = vld [vmem:[#allocation11 + $0x38] sm:$0xff] }
 0xc86   : > { %v2766_v8 = vsel %vm870_vm4, %v2762_v7, -inf }
 0xc87   : > { %2767 = vmax.xlane.f32.xlu0 %v2766_v8 }
 0xcf5   : > { %v2602_v10 = vpop.f32.mrf.mxu1 }
 0xcf6   : > { %v2759_v11 = vmul.f32 0.35355338, %v2602_v10  ;;  %v2678_v12 = vpop.f32.mrf.mxu0 }
 0xcf7   : > { %v2760_v13 = vmul.f32 0.35355338, %v2678_v12  ;;  %v4209_v14 = vpop.f32.mrf.mxu1 }
 0xcf8   : > { %v4214_v15 = vpop.f32.mrf.mxu0  ;;  %v2763_v16 = vsel %vm580_vm5, -1e+09, %v2759_v11 }
 0xcf9   : > { %v2769_v17 = vsel %vm870_vm4, %v2763_v16, -inf  ;;  %v2764_v18 = vsel %vm580_vm5, -1e+09, %v2760_v13 }
 0xcfa   : > { %2770 = vmax.xlane.f32.xlu1 %v2769_v17  ;;  %v2754_v19 = vpop.f32.mrf.mxu1  ;;  %v2772_v20 = vsel %vm870_vm4, %v2764_v18, -inf }
 0xcfb   : > { %v2761_v21 = vmul.f32 0.35355338, %v2754_v19  ;;  %2773 = vmax.xlane.f32.xlu0 %v2772_v20 }
 0xcfc   : > { %v4219_v22 = vpop.f32.mrf.mxu1 }
 0xcfd   : > { %v2765_v23 = vsel %vm580_vm5, -1e+09, %v2761_v21 }
 0xcfe   : > { %v2775_v24 = vsel %vm870_vm4, %v2765_v23, -inf }
 0xcff   : > { %2776 = vmax.xlane.f32.xlu0 %v2775_v24 }
 0xd0b   : > { %2414 = vrot.lane.b32.xlu1 %v5311_v43, %s4697_s7 }
 0xd10   : > { %v2768_v25 = vpop.xlane.xlu0 %2767 }
 0xd11   : > { %v2778_v26 = vsub.f32 %v2762_v7, %v2768_v25 }
 0xd13   : > { %v2782_v27 = vmul.f32 1.442695, %v2778_v26 }
 0xd15   : > { %4419 = vpow2.f32 %v2782_v27 }
 0xd22   : > { %v4420_v28 = vpop.eup %4419 }
 0xd23   : > { %v2790_v29 = vsel %vm870_vm4, %v4420_v28, 0.0 }
 0xd2f   : > { %2791 = vadd.xlane.f32.xlu1 %v2790_v29 }
 0xd83   : > { %v2771_v30 = vpop.xlane.xlu1 %2770 }
 0xd84   : > { %v2779_v31 = vsub.f32 %v2763_v16, %v2771_v30  ;;  %v2774_v32 = vpop.xlane.xlu0 %2773 }
 0xd85   : > { %v2780_v33 = vsub.f32 %v2764_v18, %v2774_v32 }
 0xd86   : > { %v2784_v61 = vmul.f32 1.442695, %v2779_v31 }
 0xd87   : > { %v2786_v34 = vmul.f32 1.442695, %v2780_v33  ;;  %v2415_v0 = vpop.permute.xlu1 %2414 }
 0xd88   : > { %4421 = vpow2.f32 %v2784_v61  ;;  %2417 = vst.msk [vmem:[#allocation4 + $0x8] sm:$0xff] %vm870_vm4, %v2415_v0  ;;  %v2777_v35 = vpop.xlane.xlu0 %2776 }
 0xd89   : > { %4423 = vpow2.f32 %v2786_v34  ;;  %v2781_v36 = vsub.f32 %v2765_v23, %v2777_v35  ;;  %v3458_v35 = vld [vmem:[#allocation13 + $0x38] sm:$0xff] }
 0xd8b   : > { %v2788_v37 = vmul.f32 1.442695, %v2781_v36  ;;  %v3457_v36 = vld [vmem:[#allocation13 + $0x30] sm:$0xff] }
 0xd8d   : > { %4425 = vpow2.f32 %v2788_v37  ;;  %v3455_v37 = vld [vmem:[#allocation13 + $0x20] sm:$0xff] }
 0xd8f   : > { %v2451_v38 = vld [vmem:[#allocation4 + $0x8] sm:$0xff] }
 0xd90   : > { %4226 = vmatpush3.msra.mxu1 %v2451_v38  ;;  %v3928_v38 = vld [vmem:[%s5519_s8 + $0x78] sm:$0xff] }
 0xd91   : > { %4235 = vmatprep.subr.mxu1 %v4695_v9 }
 0xd95   : > { %v4422_v39 = vpop.eup %4421 }
 0xd96   : > { %v4424_v40 = vpop.eup %4423  ;;  %v2793_v41 = vsel %vm870_vm4, %v4422_v39, 0.0 }
 0xd97   : > { %2794 = vadd.xlane.f32.xlu0 %v2793_v41  ;;  %v2796_v42 = vsel %vm870_vm4, %v4424_v40, 0.0  ;;  %v3925_v41 = vld [vmem:[%s5519_s8 + $0x60] sm:$0xff] }
 0xd98   : > { %2797 = vadd.xlane.f32.xlu1 %v2796_v42  ;;  %v3924_v42 = vld [vmem:[%s5519_s8 + $0x58] sm:$0xff] }
 0xd9a   : > { %v4426_v45 = vpop.eup %4425 }
 0xd9b   : > { %v2799_v46 = vsel %vm870_vm4, %v4426_v45, 0.0 }
 0xd9c   : > { %2800 = vadd.xlane.f32.xlu0 %v2799_v46 }
 0xda9   : > { %2438 = vrot.lane.b32.xlu1 %v5311_v43, %s4699_s28  ;;  %s5569_s28 = sld [smem:[#allocation33_spill]] }
 0xdaf   : > { %s3682_s3 = scalar_lea.hbm %s5569_s28, %s3935_s25 }
 0xdb2   : > { %2426 = vrot.lane.b32.xlu0 %v5311_v43, %s4698_s20 }
 0xdb8   : > { %v2792_v47 = vpop.xlane.xlu1 %2791 }
 0xdb9   : > { %4427 = vrcp.f32 %v2792_v47 }
 0xdc6   : > { %v4428_v48 = vpop.eup %4427 }
 0xdc7   : > { %v2806_v49 = vmul.f32 %v4428_v48, %v4420_v28  ;;  %v3914_v28 = vld [vmem:[%s5516_s5 + $0x1] ss:$0 sm:$0xff] }
 0xdc9   : > { %4223 = vmatmul.mubr.msk.f32.vlgmr.msra.gmra.mxu0 %vm870_vm4, %v2806_v49 }
 0xdca   : > { %4232 = vmatprep.mubr.msk.f32.mxu0 %vm4696_vm1, %v4695_v9 }
 0xe20   : > { %v2795_v50 = vpop.xlane.xlu0 %2794 }
 0xe21   : > { %4429 = vrcp.f32 %v2795_v50  ;;  %v2798_v51 = vpop.xlane.xlu1 %2797 }
 0xe22   : > { %4431 = vrcp.f32 %v2798_v51 }
 0xe25   : > { %v2439_v52 = vpop.permute.xlu1 %2438  ;;  %v2801_v44 = vpop.xlane.xlu0 %2800 }
 0xe26   : > { %2441 = vst.msk [vmem:[#allocation4 + $0x18] sm:$0xff] %vm870_vm4, %v2439_v52  ;;  %4433 = vrcp.f32 %v2801_v44  ;;  %v3917_v44 = vld [vmem:[%s5521_s10 + $0x3] ss:$0 sm:$0xff] }
 0xe29   : > { %v2427_v53 = vpop.permute.xlu0 %2426 }
 0xe2a   : > { %2429 = vst.msk [vmem:[#allocation4 + $0x10] sm:$0xff] %vm870_vm4, %v2427_v53 }
 0xe2d   : > { %v2453_v57 = vld [vmem:[#allocation4 + $0x18] sm:$0xff] }
 0xe2e   : > { %v4430_v43 = vpop.eup %4429 }
 0xe2f   : > { %v4432_v54 = vpop.eup %4431  ;;  %v2807_v55 = vmul.f32 %v4430_v43, %v4422_v39  ;;  %v3927_v39 = vld [vmem:[%s5519_s8 + $0x70] sm:$0xff] }
 0xe30   : > { %v2808_v56 = vmul.f32 %v4432_v54, %v4424_v40  ;;  %v3926_v40 = vld [vmem:[%s5519_s8 + $0x68] sm:$0xff]  ;;  %v3918_v54 = vld [vmem:[%s5522_s11 + $0x3] ss:$0 sm:$0xff] }
 0xe31   : > { %4228 = vmatmul.mubr.msk.f32.vlgmr.msra.gmra.mxu1 %vm870_vm4, %v2807_v55  ;;  %v2452_v58 = vld [vmem:[#allocation4 + $0x10] sm:$0xff] }
 0xe32   : > { %4236 = vmatpush3.msra.mxu1 %v2453_v57  ;;  %4231 = vmatpush3.msra.mxu0 %v2452_v58  ;;  %v3923_v57 = vld [vmem:[%s5519_s8 + $0x50] sm:$0xff]  ;;  %v3922_v58 = vld [vmem:[%s5519_s8 + $0x48] sm:$0xff] }
 0xe33   : > { %v4434_v60 = vpop.eup %4433  ;;  %4233 = vmatmul.mubr.msk.f32.vlgmr.msra.gmra.mxu0 %vm870_vm4, %v2808_v56  ;;  %4237 = vmatprep.mubr.msk.f32.mxu1 %vm4696_vm1, %v4695_v9 }
 0xe34   : > { %v2809_v62 = vmul.f32 %v4434_v60, %v4426_v45  ;;  %4240 = vmatprep.subr.mxu0 %v4695_v9  ;;  %4242 = vmatprep.mubr.msk.f32.mxu0 %vm4696_vm1, %v4695_v9  ;;  %v3919_v60 = vld [vmem:[#allocation14 + $0x1] ss:$0 sm:$0xff] }
 0xe35   : > { %4241 = vmatpush3.msra.mxu0 %v3103_v59  ;;  %4245 = vmatprep.subr.mxu1 %v4695_v9  ;;  %v3921_v59 = vld [vmem:[%s5519_s8 + $0x40] sm:$0xff] }
 0xe36   : > { %4238 = vmatmul.mubr.msk.f32.vlgmr.msra.gmra.mxu1 %vm870_vm4, %v2809_v62  ;;  %4250 = vmatprep.subr.mxu0 %v4695_v9 }
 0xe37   : > { %4247 = vmatprep.mubr.msk.f32.mxu1 %vm4696_vm1, %v4695_v9  ;;  %4246 = vmatpush3.msra.mxu1 %v3104_v63 }
 0xe38   : > { %4255 = vmatprep.subr.mxu1 %v4695_v9 }
 0xe89   : > { %v2879_v2 = vpop.f32.mrf.mxu0 }
 0xe8a   : > { %4243 = vmatmul.mubr.msk.f32.vlgmr.msra.gmra.mxu0 %vm870_vm4, %v2879_v2 }
 0xe8b   : > { %v4224_v3 = vpop.f32.mrf.mxu0  ;;  %4251 = vmatpush3.msra.mxu0 %v3105_v1  ;;  %4252 = vmatprep.mubr.msk.f32.mxu0 %vm4696_vm1, %v4695_v9 }
 0xe8c   : > { %4260 = vmatprep.subr.mxu0 %v4695_v9 }
 0xef1   : > { %v2952_v6 = vpop.f32.mrf.mxu1 }
 0xef2   : > { %4248 = vmatmul.mubr.msk.f32.vlgmr.msra.gmra.mxu1 %vm870_vm4, %v2952_v6 }
 0xef3   : > { %v4229_v7 = vpop.f32.mrf.mxu1  ;;  %v3025_v8 = vpop.f32.mrf.mxu0  ;;  %4256 = vmatpush3.msra.mxu1 %v3106_v4  ;;  %4257 = vmatprep.mubr.msk.f32.mxu1 %vm4696_vm1, %v4695_v9  ;;  %v3931_v4 = vld [vmem:[%s5520_s9 + $0x1] ss:$0 sm:$0xff] }
 0xef4   : > { %4253 = vmatmul.mubr.msk.f32.vlgmr.msra.gmra.mxu0 %vm870_vm4, %v3025_v8  ;;  %4271 = vmatprep.subr.mxu1 %v4695_v9 }
 0xef5   : > { %v4234_v10 = vpop.f32.mrf.mxu0  ;;  %4268 = vmatprep.mubr.msk.f32.mxu0 %vm4696_vm1, %v4695_v9  ;;  %4261 = vmatpush3.msra.mxu0 %v3458_v35 }
 0xef6   : > { %v3098_v11 = vpop.f32.mrf.mxu1  ;;  %4262 = vmatprep.subr.mxu0 %v4695_v9 }
 0xef7   : > { %4258 = vmatmul.mubr.msk.f32.vlgmr.msra.gmra.mxu1 %vm870_vm4, %v3098_v11  ;;  %4263 = vmatpush3.msra.mxu0 %v3457_v36 }
 0xef8   : > { %v4239_v12 = vpop.f32.mrf.mxu1  ;;  %4287 = vmatprep.mubr.msk.f32.mxu1 %vm4696_vm1, %v4695_v9  ;;  %4264 = vmatprep.subr.mxu0 %v4695_v9 }
 0xef9   : > { %4272 = vmatpush3.msra.mxu1 %v3928_v38 }
 0xefa   : > { %4273 = vmatprep.subr.mxu1 %v4695_v9 }
 0xefb   : > { %4274 = vmatpush3.msra.mxu1 %v3927_v39 }
 0xefc   : > { %4275 = vmatprep.subr.mxu1 %v4695_v9 }
 0xefd   : > { %4276 = vmatpush3.msra.mxu1 %v3926_v40 }
 0xefe   : > { %4277 = vmatprep.subr.mxu1 %v4695_v9 }
 0xeff   : > { %4278 = vmatpush3.msra.mxu1 %v3925_v41 }
 0xf00   : > { %4279 = vmatprep.subr.mxu1 %v4695_v9 }
 0xf01   : > { %4280 = vmatpush3.msra.mxu1 %v3924_v42 }
 0xf02   : > { %4281 = vmatprep.subr.mxu1 %v4695_v9 }
 0xf03   : > { %4282 = vmatpush3.msra.mxu1 %v3923_v57 }
 0xf04   : > { %4283 = vmatprep.subr.mxu1 %v4695_v9 }
 0xf05   : > { %4284 = vmatpush3.msra.mxu1 %v3922_v58 }
 0xf06   : > { %4285 = vmatprep.subr.mxu1 %v4695_v9 }
 0xf07   : > { %4286 = vmatpush3.msra.mxu1 %v3921_v59 }
 0xf4a   : > { %v3176_v13 = vpop.f32.mrf.mxu0 }
 0xf4b   : > { %v3399_v16 = vsel %vm583_vm0, %v3176_v13, 0.0 }
 0xf4c   : > { %v4244_v14 = vpop.f32.mrf.mxu0 }
 0xfb2   : > { %v3249_v15 = vpop.f32.mrf.mxu1 }
 0xfb3   : > { %v3400_v17 = vsel %vm583_vm0, %v3249_v15, 0.0 }
 0xfb4   : > { %v3401_v18 = vadd.f32 %v3400_v17, %v3399_v16  ;;  %v4249_v19 = vpop.f32.mrf.mxu1  ;;  %v3322_v20 = vpop.f32.mrf.mxu0 }
 0xfb5   : > { %v3402_v21 = vsel %vm583_vm0, %v3322_v20, 0.0 }
 0xfb6   : > { %v3403_v22 = vadd.f32 %v3402_v21, %v3401_v18  ;;  %v4254_v23 = vpop.f32.mrf.mxu0 }
 0xfb7   : > { %v3395_v24 = vpop.f32.mrf.mxu1  ;;  %v3932_v23 = vld [vmem:[%s5523_s12] ss:$0 sm:$0xff] }
 0xfb8   : > { %v3404_v25 = vsel %vm583_vm0, %v3395_v24, 0.0 }
 0xfb9   : > { %v3405_v26 = vadd.f32 %v3404_v25, %v3403_v22  ;;  %v4259_v27 = vpop.f32.mrf.mxu1 }
 0xfbb   : > { %v3406_v29 = vadd.f32 %v3405_v26, %v5242_v5  ;;  %v3456_v5 = vld [vmem:[#allocation13 + $0x28] sm:$0xff]  ;;  %v3933_v26 = vld [vmem:[%s5568_s26] ss:$0 sm:$0xff] }
 0xfbc   : > { %4265 = vmatpush3.msra.mxu0 %v3456_v5 }
 0xfbd   : > { %v5414_v30 = vadd.f32 %v3914_v28, %v3406_v29  ;;  %4266 = vmatprep.subr.mxu0 %v4695_v9 }
 0xfbe   : > { %4267 = vmatpush3.msra.mxu0 %v3455_v37 }
 0xfbf   : > { %v3420_v31 = vsel %vm583_vm0, %v5414_v30, 0.0 }
 0xfc0   : > { %3421 = vadd.xlane.f32.xlu1 %v3420_v31 }
0x1049   : > { %v3422_v32 = vpop.xlane.xlu1 %3421 }
0x104a   : > { %v3423_v33 = vmul.f32 0.03125, %v3422_v32 }
0x104c   : > { %v3424_v61 = vsub.f32 %v5414_v30, %v3423_v33 }
0x104e   : > { %v3425_v34 = vmul.f32 %v3424_v61, %v3424_v61  ;;  %v3443_v53 = vmul.f32 %v3917_v44, %v3424_v61 }
0x1050   : > { %v3426_v0 = vsel %vm583_vm0, %v3425_v34, 0.0 }
0x1051   : > { %3427 = vadd.xlane.f32.xlu0 %v3426_v0 }
0x10da   : > { %v3428_v45 = vpop.xlane.xlu0 %3427 }
0x10db   : > { %v3429_v46 = vmul.f32 0.032258064, %v3428_v45 }
0x10dd   : > { %4435 = vrsqrt.f32 %v3429_v46  ;;  %vm3432_vm11 = vcmp.eq.f32.partialorder %v3429_v46, inf  ;;  %v3435_v49 = vand.u32 2147483648, %v3429_v46  ;;  %vm3434_vm12 = vcmp.eq.f32.partialorder %v3429_v46, 0.0 }
0x10ea   : > { %v4436_v47 = vpop.eup %4435 }
0x10eb   : > { %v3431_v48 = vmul.f32 %v4436_v47, %v3429_v46 }
0x10ed   : > { %v3433_v50 = vsel %vm3432_vm11, %v3429_v46, %v3431_v48 }
0x10ee   : > { %v3436_v51 = vsel %vm3434_vm12, %v3435_v49, %v3433_v50 }
0x10ef   : > { %v3444_v52 = vadd.f32 1e-06, %v3436_v51 }
0x10f1   : > { %4437 = vrcp.f32 %v3444_v52 }
0x10fe   : > { %v4438_v43 = vpop.eup %4437 }
0x10ff   : > { %v3446_v55 = vmul.f32 %v4438_v43, %v3443_v53 }
0x1101   : > { %v3453_v56 = vadd.f32 %v3918_v54, %v3446_v55 }
0x1103   : > { %4269 = vmatmul.mubr.msk.f32.vlgmr.msra.gmra.mxu0 %vm583_vm0, %v3453_v56 }
0x11c3   : > { %v3536_v62 = vpop.f32.mrf.mxu0 }
0x11c4   : > { %v3537_v63 = vadd.f32 %v3919_v60, %v3536_v62 }
0x11c5   : > { %v4270_v1 = vpop.f32.mrf.mxu0 }
0x11c6   : > { %v3540_v2 = vmax.f32 %v3537_v63, 0.0 }
0x11c8   : > { %4288 = vmatmul.mubr.msk.f32.vlgmr.msra.gmra.mxu1 %vm2027_vm8, %v3540_v2 }
0x1288   : > { %v3619_v3 = vpop.f32.mrf.mxu1 }
0x1289   : > { %v3623_v6 = vadd.f32 %v3619_v3, %v5414_v30 }
0x128a   : > { %v4289_v7 = vpop.f32.mrf.mxu1 }
0x128b   : > { %v3632_v8 = vadd.f32 %v3931_v4, %v3623_v6 }
0x128d   : > { %v3635_v10 = vsel %vm583_vm0, %v3632_v8, 0.0 }
0x128e   : > { %3636 = vadd.xlane.f32.xlu0 %v3635_v10 }
0x1317   : > { %v3637_v9 = vpop.xlane.xlu0 %3636 }
0x1318   : > { %v3638_v11 = vmul.f32 0.03125, %v3637_v9 }
0x131a   : > { %v3639_v12 = vsub.f32 %v3632_v8, %v3638_v11 }
0x131c   : > { %v3640_v13 = vmul.f32 %v3639_v12, %v3639_v12  ;;  %v3658_v24 = vmul.f32 %v3932_v23, %v3639_v12 }
0x131e   : > { %v3641_v14 = vsel %vm583_vm0, %v3640_v13, 0.0 }
0x131f   : > { %3642 = vadd.xlane.f32.xlu1 %v3641_v14 }
0x13a8   : > { %v3643_v15 = vpop.xlane.xlu1 %3642 }
0x13a9   : > { %v3644_v16 = vmul.f32 0.032258064, %v3643_v15 }
0x13ab   : > { %4439 = vrsqrt.f32 %v3644_v16  ;;  %vm3647_vm13 = vcmp.eq.f32.partialorder %v3644_v16, inf  ;;  %v3650_v19 = vand.u32 2147483648, %v3644_v16  ;;  %vm3649_vm14 = vcmp.eq.f32.partialorder %v3644_v16, 0.0 }
0x13b8   : > { %v4440_v17 = vpop.eup %4439 }
0x13b9   : > { %v3646_v18 = vmul.f32 %v4440_v17, %v3644_v16 }
0x13bb   : > { %v3648_v20 = vsel %vm3647_vm13, %v3644_v16, %v3646_v18 }
0x13bc   : > { %v3651_v21 = vsel %vm3649_vm14, %v3650_v19, %v3648_v20 }
0x13bd   : > { %v3659_v22 = vadd.f32 1e-06, %v3651_v21 }
0x13bf   : > { %4441 = vrcp.f32 %v3659_v22 }
0x13cc   : > { %v4442_v25 = vpop.eup %4441 }
0x13cd   : > { %v3661_v27 = vmul.f32 %v4442_v25, %v3658_v24 }
0x13cf   : > { %v3668_v28 = vadd.f32 %v3933_v26, %v3661_v27 }
0x13d1   : > { %3669 = vst.msk [vmem:[%s577_s23] sm:$0xff] %vm583_vm0, %v3668_v28 }
0x13d2   : > { %4616 = shalt.err (!%p4613_p10)
}
0x13d3   : > { %s4617_s13 = scalar_lea.hbm %s3682_s3, 128  ;;  %s4621_s17 = scalar_lea.hbm %s5569_s28, 256 }
0x13d4   : > { %p4618_p3 = scmp.ne.s32.totalorder %s3682_s3, %s4617_s13  ;;  %p4622_p8 = scmp.lt.s32.totalorder %s3682_s3, %s5569_s28 }
0x13d5   : > { %p4623_p12 = scmp.lt.s32.totalorder %s4621_s17, %s4617_s13 }
0x13d6   : > { %p4619_p7 = pnand %p4618_p3, %p5570_p9 }
0x13d7   : > { %p4624_p0 = por %p4623_p12, %p4622_p8 }
0x13d8   : > { %p4620_p2 = pneg %p4619_p7 }
0x13da   : > { %p4625_p5 = pnand %p4624_p0, %p4620_p2 }
0x13dc   : > { %4628 = shalt.err (!%p4625_p5)
}
0x13dd   : > { %4310 = dma.vmem_to_hbm [thread:$0]  (%p5570_p9), %s3685_s15, 128, %s3682_s3, %s3671_s29  }
0x13de PF: > { %s5571_s26 = sld [smem:[#allocation23_spill]]  ;;  %p5574_p13 = scmp.ge.s32.totalorder %s4683_s16, 2 }
0x13df   : > { %s5572_s25 = sld [smem:[#allocation27_spill]] }
0x13e4   : > { %s3696_s23 = sand.u32 1, %s5571_s26  }
0x13e5   : > { %p5573_p11 = scmp.ne.s32.totalorder %s5572_s25, 0  ;;  %s3697_s7 = scalar_lea.sflag [#allocation7], %s3696_s23 }
0x13e7   : > { %p4333_p1 = pnand %p5574_p13, %p5573_p11 }
0x13e9   : > { %p4334_p4 = pneg %p4333_p1 }
0x13eb   : > { %4666 = dma.done.wait (%p4334_p4), %s3697_s7, 128  }
0x13ec   : > { %4668 = vsyncadd (%p4334_p4), %s3697_s7, 4294967168  ;;  %s5575_s16 = sld [smem:[#allocation25_spill]]  ;;  %s5578_s29 = smov %s4675_s30 }
0x13ed   : > { %s5576_s20 = sld [smem:[#allocation24_spill]] }
0x13ee   : > { %s5577_s15 = sld [smem:[#allocation26_spill]] }
0x13f2   : > { %p32_p6 = scmp.ge.s32.totalorder %s5575_s16, 4  }
0x13f3   : > { %s5579_s30 = smov %s5576_s20 }
0x13f4   :  { %34 = sbr.rel (!%p32_p6) target bundleno = 16 (0x10), region = 181 }
0x13f9   :  { %3702 = vsyncpa [#allocation6], 1 }
0x13fa   :  { %3704 = vsyncpa [#allocation6 + $0x1], 1 }
0x13fb   :  { %3705 = vsyncpa [#allocation9], 1 }
0x13fc   :  { %3707 = vsyncpa [#allocation9 + $0x1], 1 }
0x13fd   :  { %3708 = vsyncpa [#allocation12], 1 }
0x13fe   :  { %3709 = vsyncpa [#allocation15], 1 }
0x13ff   :  { %3710 = vsyncpa [#allocation7], 1 }
0x1400   :  { %3712 = vsyncpa [#allocation7 + $0x1], 1 }

</bundles_post_ra>
